<compile_context>
chip_gen: v6e
topology: v6e:2x2x1
jax: 0.10.0
libtpu: 0.0.40
codegen_flags: <defaults>
</compile_context>

<pallas_src>
import functools

import jax
import jax.numpy as jnp
from jax import lax
from jax.experimental import pallas as pl
from jax.experimental.pallas import tpu as pltpu


def _round_up(x, m):
    return (x + m - 1) // m * m


def _cdiv(a, b):
    return -(-a // b)


def _vmem_cap_bytes():
    try:
        return int(pltpu.get_tpu_info().vmem_capacity_bytes)
    except Exception:
        return 64 * (1 << 20)          # v7x lower bound; safe for all generations


def _pick_nt(ng, gkf, nout, vmem_cap):
    """Pick the GEMM N tile (multiple of 128) so the double-buffered weight tile stays
    within ~1/4 of VMEM."""
    nout128 = _round_up(nout, 128)
    budget = vmem_cap // 4
    nt = min(512, nout128)
    nt = _round_up(nt, 128)
    while nt > 128 and 2 * ng * gkf * nt * 2 > budget:
        nt -= 128
    return max(nt, 128)


# ---------------------------------------------------------------------------
# Pallas kernel: NG group-GEMMs (G taps folded into K) + fused BN affine, mask, clip.
# One kernel serves conv1, conv2 and the final Linear (NG=1, identity affine, no clip).
# ---------------------------------------------------------------------------
def _conv_gemm_kernel(lens_ref, xw_ref, w_ref, scale_ref, bias_ref, o_ref,
                      *, NG, row_step, tT, NT, NC, clip_lo, clip_hi):
    """One (N-tile, batch, time-tile) grid step.

    lens_ref : (B,) int32 SMEM      per-sequence output lengths (scalar prefetch)
    xw_ref   : (1, 1, R, G*Kf) bf16 haloed, stride-packed activation window
    w_ref    : (NG, G*Kf, NT) bf16  expanded weight N-tile (freq conv folded into N)
    scale_ref, bias_ref : (1, NT) f32  folded BatchNorm affine (identity for Linear)
    o_ref    : (1, tT, NT)
    """
    b = pl.program_id(1)
    i = pl.program_id(2)
    limit = lens_ref[b]
    rows = i * tT + lax.broadcasted_iota(jnp.int32, (tT, 1), 0)
    valid = rows < limit                                   # (tT, 1) length mask

    for c0 in range(0, NT, NC):                            # N-chunk outer (static unroll)
        acc = None
        for g in range(NG):                                # group inner (static unroll)
            a = xw_ref[0, 0, pl.ds(g * row_step, tT), :]   # (tT, G*Kf) bf16
            wgt = w_ref[g, :, pl.ds(c0, NC)]               # (G*Kf, NC) bf16
            d = jnp.dot(a, wgt, preferred_element_type=jnp.float32)
            acc = d if acc is None else acc + d            # vreg-resident accumulation
        y = acc * scale_ref[:, pl.ds(c0, NC)] + bias_ref[:, pl.ds(c0, NC)]
        y = jnp.where(valid, y, 0.0)
        if clip_lo is not None:
            y = jnp.clip(y, clip_lo, clip_hi)
        o_ref[0, :, pl.ds(c0, NC)] = y.astype(o_ref.dtype)


# ---------------------------------------------------------------------------
# Host-side glue
# ---------------------------------------------------------------------------
def _build_windows(x, ph_t, G, sh, tT, nT, NG):
    """x: (B, T, Kf) -> (B, nT, R, G*Kf) with
       W[b, i, p, j*Kf + f] = timepad(x)[b, i*tT*sh + p*sh + j, f]   (zero padded).
    Group g of the conv then reads rows [g*(G//sh), g*(G//sh) + tT)."""
    B, T, Kf = x.shape
    row_step = G // sh
    R = tT + (NG - 1) * row_step
    need = (nT - 1) * tT * sh + (R - 1) * sh + (G - 1) + 1
    pad_end = max(need - (T + ph_t), 0)
    xp = jnp.pad(x, ((0, 0), (ph_t, pad_end), (0, 0)))
    t_idx = (jnp.arange(nT)[:, None, None] * (tT * sh)
             + jnp.arange(R)[None, :, None] * sh
             + jnp.arange(G)[None, None, :])               # (nT, R, G)
    win = xp[:, t_idx.reshape(-1), :]
    return win.reshape(B, nT, R, G * Kf)


def _expand_conv_weight(w, *, f_pad, f_out, sw, out_order, G):
    """(Cout, Cin, KH, KW) -> (NG, G*f_pad*Cin, f_out*Cout).

    The frequency convolution is folded into the GEMM N dimension (zero outside the KW band)
    and G consecutive height taps are folded into K.  out_order: 'fc' -> N = fo*Cout+co,
    'cf' -> N = co*f_out+fo."""
    Cout, Cin, KH, KW = w.shape
    NG = _cdiv(KH, G)
    wp = jnp.pad(w.astype(jnp.float32), ((0, 0), (0, 0), (0, NG * G - KH), (0, 0)))
    f = jnp.arange(f_pad)[:, None, None]
    g = jnp.arange(f_out)[None, :, None]
    k = jnp.arange(KW)[None, None, :]
    sel = (f == g * sw + k).astype(jnp.float32)            # (f_pad, f_out, KW)
    if out_order == "fc":
        we = jnp.einsum("fgk,ochk->hfcgo", sel, wp)        # (NG*G, f_pad, Cin, f_out, Cout)
    else:  # "cf"
        we = jnp.einsum("fgk,ochk->hfcog", sel, wp)
    we = we.reshape(NG * G, f_pad * Cin, f_out * Cout)
    return we.reshape(NG, G * f_pad * Cin, f_out * Cout)


def _conv_stage(x_act, w_groups, *, KH, sh, G, ph_t, scale, bias, lengths, T_out,
                clip, out_dtype):
    """x_act: (B, T_in, Kf) activation with freq (x channel) flattened+padded in the last dim.
    Returns (B, T_out_p, Nout_pad); rows >= lengths[b] and pad columns are exactly 0."""
    B, T_in, Kf = x_act.shape
    NG, GKf, Nout = w_groups.shape
    assert GKf == G * Kf, (GKf, G, Kf)
    assert G % sh == 0, (G, sh)
    row_step = G // sh

    tT = max(8, min(128, _round_up(T_out, 8)))             # time tile (sublane multiple)
    nT = _cdiv(T_out, tT)
    T_out_p = nT * tT
    R = tT + (NG - 1) * row_step

    vmem_cap = _vmem_cap_bytes()
    NT = _pick_nt(NG, GKf, Nout, vmem_cap)                 # lane-dense N tile
    Nout_pad = _round_up(Nout, NT)
    nN = Nout_pad // NT
    NC = 128                                               # in-kernel N chunk (16 vregs acc)

    # ---- activation windows (bf16 before the gather; Linear stage skips the gather) ----
    xb = x_act.astype(jnp.bfloat16)
    if KH == 1 and sh == 1:
        if T_in < T_out_p:
            xb = jnp.pad(xb, ((0, 0), (0, T_out_p - T_in), (0, 0)))
        xw = xb[:, :T_out_p, :].reshape(B, nT, R, GKf)     # identity: R == tT, GKf == Kf
    else:
        xw = _build_windows(xb, ph_t, G, sh, tT, nT, NG)

    # ---- weights / affine, padded to a lane-aligned N ----
    wb = w_groups
    if Nout_pad > Nout:
        wb = jnp.pad(wb, ((0, 0), (0, 0), (0, Nout_pad - Nout)))
        scale = jnp.pad(scale, (0, Nout_pad - Nout))
        bias = jnp.pad(bias, (0, Nout_pad - Nout))
    wb = wb.astype(jnp.bfloat16)
    scale2 = scale.reshape(1, Nout_pad).astype(jnp.float32)
    bias2 = bias.reshape(1, Nout_pad).astype(jnp.float32)
    lens_i32 = lengths.astype(jnp.int32)

    out_bytes = jnp.dtype(out_dtype).itemsize
    flops = 2 * B * T_out_p * NG * GKf * Nout_pad
    bytes_accessed = (xw.size * 2 * nN + wb.size * 2 + B * T_out_p * Nout_pad * out_bytes)
    # per-step VMEM: double-buffered window / weight tile / output, plus affine + slack
    est = (2 * R * GKf * 2 + 2 * NG * GKf * NT * 2 + 2 * tT * NT * out_bytes
           + 4 * NT * 4 * 2 + (1 << 20))
    cp = dict(dimension_semantics=("parallel", "parallel", "parallel"))
    if est > 12 * (1 << 20):                               # only raise beyond defaults if needed
        cp["vmem_limit_bytes"] = int(min(est * 2, max(vmem_cap - (8 << 20), est)))

    kernel = functools.partial(
        _conv_gemm_kernel, NG=NG, row_step=row_step, tT=tT, NT=NT, NC=NC,
        clip_lo=None if clip is None else clip[0],
        clip_hi=None if clip is None else clip[1])

    grid_spec = pltpu.PrefetchScalarGridSpec(
        num_scalar_prefetch=1,
        grid=(nN, B, nT),
        in_specs=[
            pl.BlockSpec((1, 1, R, GKf), lambda n, b, i, lens: (b, i, 0, 0)),  # window
            pl.BlockSpec((NG, GKf, NT), lambda n, b, i, lens: (0, 0, n)),      # weight N-tile
            pl.BlockSpec((1, NT), lambda n, b, i, lens: (0, n)),               # BN scale
            pl.BlockSpec((1, NT), lambda n, b, i, lens: (0, n)),               # BN bias
        ],
        out_specs=pl.BlockSpec((1, tT, NT), lambda n, b, i, lens: (b, i, n)),
    )

    return pl.pallas_call(
        kernel,
        out_shape=jax.ShapeDtypeStruct((B, T_out_p, Nout_pad), out_dtype),
        grid_spec=grid_spec,
        compiler_params=pltpu.CompilerParams(**cp),
        cost_estimate=pl.CostEstimate(flops=int(flops), transcendentals=0,
                                      bytes_accessed=int(bytes_accessed)),
    )(lens_i32, xw, wb, scale2, bias2)


def fix_lengths_after_conv(lengths, kernel_size, stride, padding):
    return (lengths + 2 * padding - kernel_size) // stride + 1


def make_mask_by_length(lengths, max_length):
    return (jnp.arange(max_length)[None, :] < lengths[:, None]).astype(jnp.float32)


def init_params(key, feature_dim, out_dim):
    assert feature_dim % 4 == 0
    ks = jax.random.split(key, 11)
    p = {}
    p["w1"] = jax.random.normal(ks[0], (32, 1, 41, 11), jnp.float32) / jnp.sqrt(1 * 41 * 11)
    p["w2"] = jax.random.normal(ks[1], (32, 32, 21, 11), jnp.float32) / jnp.sqrt(32 * 21 * 11)
    p["gamma1"] = 1.0 + 0.1 * jax.random.normal(ks[2], (32,), jnp.float32)
    p["beta1"] = 0.1 * jax.random.normal(ks[3], (32,), jnp.float32)
    p["mean1"] = 0.1 * jax.random.normal(ks[4], (32,), jnp.float32)
    p["var1"] = 1.0 + 0.1 * jax.random.uniform(ks[5], (32,), jnp.float32)
    p["gamma2"] = 1.0 + 0.1 * jax.random.normal(ks[6], (32,), jnp.float32)
    p["beta2"] = 0.1 * jax.random.normal(ks[7], (32,), jnp.float32)
    p["mean2"] = 0.1 * jax.random.normal(ks[8], (32,), jnp.float32)
    p["var2"] = 1.0 + 0.1 * jax.random.uniform(ks[9], (32,), jnp.float32)
    out_feature_dim = 32 * feature_dim // 2
    p["w_lin"] = jax.random.normal(ks[10], (out_dim, out_feature_dim), jnp.float32) / jnp.sqrt(
        out_feature_dim)
    return p


# ---------------------------------------------------------------------------
# Forward pass (Pallas-backed)
# ---------------------------------------------------------------------------
def conv_subsampling_4x2(params, x, lengths):
    """x: (B, T, F) f32, lengths: (B,) int32 -> ((B, T//4, out_dim) f32, (B,) int32)."""
    B, T, F = x.shape
    eps = 1e-5

    F1 = (F + 2 * 5 - 11) // 2 + 1
    T1 = (T + 2 * 20 - 41) // 2 + 1
    F2 = (F1 + 2 * 5 - 11) // 1 + 1
    T2 = (T1 + 2 * 10 - 21) // 2 + 1
    l1 = fix_lengths_after_conv(lengths, 41, 2, 20)
    l2 = fix_lengths_after_conv(l1, 21, 2, 10)

    s1 = params["gamma1"] / jnp.sqrt(params["var1"] + eps)
    b1 = params["beta1"] - params["mean1"] * s1
    s2 = params["gamma2"] / jnp.sqrt(params["var2"] + eps)
    b2 = params["beta2"] - params["mean2"] * s2

    # ---- conv1 (41x11, stride (2,2), pad (20,5)) + mask + bn1 + mask + hardtanh ----
    # Cin=1 -> fold G1=8 height taps into K (K: F+10 -> 8*(F+10)).  Output "fc" order.
    G1 = 8
    x_fp = jnp.pad(x.astype(jnp.bfloat16), ((0, 0), (0, 0), (5, 5)))
    w1g = _expand_conv_weight(params["w1"], f_pad=F + 10, f_out=F1, sw=2,
                              out_order="fc", G=G1)
    y1 = _conv_stage(x_fp, w1g, KH=41, sh=2, G=G1, ph_t=20,
                     scale=jnp.tile(s1, F1), bias=jnp.tile(b1, F1),
                     lengths=l1, T_out=T1, clip=(0.0, 20.0), out_dtype=jnp.bfloat16)
    y1 = y1[:, :, :F1 * 32]            # drop N padding; rows >= l1 are exactly 0

    # ---- conv2 (21x11, stride (2,1), pad (10,5)) + mask + bn2 + mask + hardtanh ----
    # G2 = sh = 2 (no window duplication).  Output directly channel-major/freq-minor ("cf"),
    # so the PyTorch transpose(1,2).view(B, T, C*F) relayout is fused away.
    G2 = 2
    y1_fp = jnp.pad(y1, ((0, 0), (0, 0), (5 * 32, 5 * 32)))   # freq pad in (f, c) layout
    w2g = _expand_conv_weight(params["w2"], f_pad=F1 + 10, f_out=F2, sw=1,
                              out_order="cf", G=G2)
    y2 = _conv_stage(y1_fp, w2g, KH=21, sh=2, G=G2, ph_t=10,
                     scale=jnp.repeat(s2, F2), bias=jnp.repeat(b2, F2),
                     lengths=l2, T_out=T2, clip=(0.0, 20.0), out_dtype=jnp.bfloat16)
    y2 = y2[:, :, :32 * F2]

    # ---- Linear (no bias) + final mask: same kernel, KH=1 identity (no window gather) ----
    out_dim = params["w_lin"].shape[0]
    w_ling = params["w_lin"].astype(jnp.float32).T.reshape(1, 32 * F2, out_dim)
    out = _conv_stage(y2, w_ling, KH=1, sh=1, G=1, ph_t=0,
                      scale=jnp.ones((out_dim,), jnp.float32),
                      bias=jnp.zeros((out_dim,), jnp.float32),
                      lengths=l2, T_out=T2, clip=None, out_dtype=jnp.float32)
    return out[:, :T2, :out_dim], l2.astype(jnp.int32)


# ---------------------------------------------------------------------------
# Pure-JAX reference (f32, highest precision) for the correctness check
# ---------------------------------------------------------------------------
def reference(params, x, lengths):
    B, T, F = x.shape
    eps = 1e-5
    dn = ("NCHW", "OIHW", "NCHW")
    hp = lax.Precision.HIGHEST
    y = lax.conv_general_dilated(x[:, None], params["w1"], (2, 2), ((20, 20), (5, 5)),
                                 dimension_numbers=dn, precision=hp)
    l1 = fix_lengths_after_conv(lengths, 41, 2, 20)
    m1 = make_mask_by_length(l1, y.shape[2])[:, None, :, None]
    y = y * m1
    s1 = params["gamma1"] / jnp.sqrt(params["var1"] + eps)
    b1 = params["beta1"] - params["mean1"] * s1
    y = y * s1[None, :, None, None] + b1[None, :, None, None]
    y = jnp.clip(y * m1, 0.0, 20.0)

    y = lax.conv_general_dilated(y, params["w2"], (2, 1), ((10, 10), (5, 5)),
                                 dimension_numbers=dn, precision=hp)
    l2 = fix_lengths_after_conv(l1, 21, 2, 10)
    m2 = make_mask_by_length(l2, y.shape[2])[:, None, :, None]
    y = y * m2
    s2 = params["gamma2"] / jnp.sqrt(params["var2"] + eps)
    b2 = params["beta2"] - params["mean2"] * s2
    y = y * s2[None, :, None, None] + b2[None, :, None, None]
    y = jnp.clip(y * m2, 0.0, 20.0)

    _, c, t, f = y.shape
    y = jnp.transpose(y, (0, 2, 1, 3)).reshape(B, t, c * f)
    y = jnp.matmul(y, params["w_lin"].T, precision=hp)
    y = y * make_mask_by_length(l2, t)[:, :, None]
    return y, l2.astype(jnp.int32)


if __name__ == "__main__":
    B, T, F, out_dim = 2, 16, 16, 32                    # feature_dim % 4 == 0
    key = jax.random.PRNGKey(0)
    kx, kp = jax.random.split(key, 2)
    x = jax.random.normal(kx, (B, T, F), jnp.float32)
    # max(lengths) == T so the PyTorch mask-broadcast invariant holds.
    lengths = jnp.array([T, 11], jnp.int32)
    params = init_params(kp, F, out_dim)

    out, out_lengths = conv_subsampling_4x2(params, x, lengths)
    out = jax.block_until_ready(out)

    ref_out, ref_lengths = reference(params, x, lengths)
    assert out.shape == (B, T // 4, out_dim), out.shape
    assert jnp.array_equal(out_lengths, ref_lengths), (out_lengths, ref_lengths)
    max_err = float(jnp.max(jnp.abs(out - ref_out)))
    # Intentional precision choice: bf16 GEMM operands / f32 accumulation through two conv
    # layers + linear -> expected max deviation vs the f32 reference is ~1-3e-2.
    assert jnp.allclose(out, ref_out, atol=5e-2, rtol=5e-2), max_err
    print("KERNEL_OK")
</pallas_src>

<mosaic_0001>
module attributes {stable_mosaic.version = 11 : i64} {
  func.func @_conv_gemm_kernel(%arg0: i32, %arg1: i32, %arg2: i32, %arg3: memref<2xi32, #tpu.memory_space<smem>>, %arg4: memref<1x1x28x208xbf16, #tpu.memory_space<vmem>>, %arg5: memref<6x208x256xbf16, #tpu.memory_space<vmem>>, %arg6: memref<1x256xf32, #tpu.memory_space<vmem>>, %arg7: memref<1x256xf32, #tpu.memory_space<vmem>>, %arg8: memref<1x8x256xbf16, #tpu.memory_space<vmem>>) attributes {dimension_semantics = [#tpu.dimension_semantics<parallel>, #tpu.dimension_semantics<parallel>, #tpu.dimension_semantics<parallel>], iteration_bounds = array<i64: 1, 2, 1>, scalar_prefetch = 1 : i64, scratch_operands = 0 : i64, tpu.core_type = #tpu.core_type<tc>, window_params = [{transform_indices = @transform_0, window_bounds = array<i64: 1, 1, 28, 208>}, {transform_indices = @transform_1, window_bounds = array<i64: 6, 208, 256>}, {transform_indices = @transform_2, window_bounds = array<i64: 1, 256>}, {transform_indices = @transform_3, window_bounds = array<i64: 1, 256>}, {transform_indices = @transform_4, window_bounds = array<i64: 1, 8, 256>}]} {
    %0 = arith.index_cast %arg1 : i32 to index
    %1 = memref.load %arg3[%0] : memref<2xi32, #tpu.memory_space<smem>>
    %c8_i32 = arith.constant 8 : i32
    %2 = arith.muli %arg2, %c8_i32 : i32
    %3 = tpu.iota {dimensions = array<i32: 0>} : vector<8x1xi32>
    %4 = vector.broadcast %2 : i32 to vector<8x1xi32>
    %5 = arith.addi %4, %3 : vector<8x1xi32>
    %6 = vector.broadcast %1 : i32 to vector<8x1xi32>
    %7 = arith.cmpi slt, %5, %6 : vector<8x1xi32>
    %c0 = arith.constant 0 : index
    %c0_0 = arith.constant 0 : index
    %c0_1 = arith.constant 0 : index
    %c0_2 = arith.constant 0 : index
    %8 = vector.load %arg4[%c0, %c0_0, %c0_1, %c0_2] : memref<1x1x28x208xbf16, #tpu.memory_space<vmem>>, vector<1x1x8x208xbf16>
    %9 = vector.shape_cast %8 : vector<1x1x8x208xbf16> to vector<8x208xbf16>
    %c0_3 = arith.constant 0 : index
    %c0_4 = arith.constant 0 : index
    %c0_5 = arith.constant 0 : index
    %10 = vector.load %arg5[%c0_3, %c0_4, %c0_5] : memref<6x208x256xbf16, #tpu.memory_space<vmem>>, vector<1x208x128xbf16>
    %11 = vector.shape_cast %10 : vector<1x208x128xbf16> to vector<208x128xbf16>
    %cst = arith.constant dense<0.000000e+00> : vector<8x128xf32>
    %12 = tpu.matmul %9, %11, %cst {dimension_numbers = #tpu.dot_dimension_numbers<[1], [0], [0], [1], [0, 0, 1, 1], [], []>} : vector<8x208xbf16>, vector<208x128xbf16>, vector<8x128xf32> -> vector<8x128xf32>
    %c0_6 = arith.constant 0 : index
    %c0_7 = arith.constant 0 : index
    %c4 = arith.constant 4 : index
    %c0_8 = arith.constant 0 : index
    %13 = vector.load %arg4[%c0_6, %c0_7, %c4, %c0_8] : memref<1x1x28x208xbf16, #tpu.memory_space<vmem>>, vector<1x1x8x208xbf16>
    %14 = vector.shape_cast %13 : vector<1x1x8x208xbf16> to vector<8x208xbf16>
    %c1 = arith.constant 1 : index
    %c0_9 = arith.constant 0 : index
    %c0_10 = arith.constant 0 : index
    %15 = vector.load %arg5[%c1, %c0_9, %c0_10] : memref<6x208x256xbf16, #tpu.memory_space<vmem>>, vector<1x208x128xbf16>
    %16 = vector.shape_cast %15 : vector<1x208x128xbf16> to vector<208x128xbf16>
    %cst_11 = arith.constant dense<0.000000e+00> : vector<8x128xf32>
    %17 = tpu.matmul %14, %16, %cst_11 {dimension_numbers = #tpu.dot_dimension_numbers<[1], [0], [0], [1], [0, 0, 1, 1], [], []>} : vector<8x208xbf16>, vector<208x128xbf16>, vector<8x128xf32> -> vector<8x128xf32>
    %18 = arith.addf %12, %17 : vector<8x128xf32>
    %c0_12 = arith.constant 0 : index
    %c0_13 = arith.constant 0 : index
    %c8 = arith.constant 8 : index
    %c0_14 = arith.constant 0 : index
    %19 = vector.load %arg4[%c0_12, %c0_13, %c8, %c0_14] : memref<1x1x28x208xbf16, #tpu.memory_space<vmem>>, vector<1x1x8x208xbf16>
    %20 = vector.shape_cast %19 : vector<1x1x8x208xbf16> to vector<8x208xbf16>
    %c2 = arith.constant 2 : index
    %c0_15 = arith.constant 0 : index
    %c0_16 = arith.constant 0 : index
    %21 = vector.load %arg5[%c2, %c0_15, %c0_16] : memref<6x208x256xbf16, #tpu.memory_space<vmem>>, vector<1x208x128xbf16>
    %22 = vector.shape_cast %21 : vector<1x208x128xbf16> to vector<208x128xbf16>
    %cst_17 = arith.constant dense<0.000000e+00> : vector<8x128xf32>
    %23 = tpu.matmul %20, %22, %cst_17 {dimension_numbers = #tpu.dot_dimension_numbers<[1], [0], [0], [1], [0, 0, 1, 1], [], []>} : vector<8x208xbf16>, vector<208x128xbf16>, vector<8x128xf32> -> vector<8x128xf32>
    %24 = arith.addf %18, %23 : vector<8x128xf32>
    %c0_18 = arith.constant 0 : index
    %c0_19 = arith.constant 0 : index
    %c12 = arith.constant 12 : index
    %c0_20 = arith.constant 0 : index
    %25 = vector.load %arg4[%c0_18, %c0_19, %c12, %c0_20] : memref<1x1x28x208xbf16, #tpu.memory_space<vmem>>, vector<1x1x8x208xbf16>
    %26 = vector.shape_cast %25 : vector<1x1x8x208xbf16> to vector<8x208xbf16>
    %c3 = arith.constant 3 : index
    %c0_21 = arith.constant 0 : index
    %c0_22 = arith.constant 0 : index
    %27 = vector.load %arg5[%c3, %c0_21, %c0_22] : memref<6x208x256xbf16, #tpu.memory_space<vmem>>, vector<1x208x128xbf16>
    %28 = vector.shape_cast %27 : vector<1x208x128xbf16> to vector<208x128xbf16>
    %cst_23 = arith.constant dense<0.000000e+00> : vector<8x128xf32>
    %29 = tpu.matmul %26, %28, %cst_23 {dimension_numbers = #tpu.dot_dimension_numbers<[1], [0], [0], [1], [0, 0, 1, 1], [], []>} : vector<8x208xbf16>, vector<208x128xbf16>, vector<8x128xf32> -> vector<8x128xf32>
    %30 = arith.addf %24, %29 : vector<8x128xf32>
    %c0_24 = arith.constant 0 : index
    %c0_25 = arith.constant 0 : index
    %c16 = arith.constant 16 : index
    %c0_26 = arith.constant 0 : index
    %31 = vector.load %arg4[%c0_24, %c0_25, %c16, %c0_26] : memref<1x1x28x208xbf16, #tpu.memory_space<vmem>>, vector<1x1x8x208xbf16>
    %32 = vector.shape_cast %31 : vector<1x1x8x208xbf16> to vector<8x208xbf16>
    %c4_27 = arith.constant 4 : index
    %c0_28 = arith.constant 0 : index
    %c0_29 = arith.constant 0 : index
    %33 = vector.load %arg5[%c4_27, %c0_28, %c0_29] : memref<6x208x256xbf16, #tpu.memory_space<vmem>>, vector<1x208x128xbf16>
    %34 = vector.shape_cast %33 : vector<1x208x128xbf16> to vector<208x128xbf16>
    %cst_30 = arith.constant dense<0.000000e+00> : vector<8x128xf32>
    %35 = tpu.matmul %32, %34, %cst_30 {dimension_numbers = #tpu.dot_dimension_numbers<[1], [0], [0], [1], [0, 0, 1, 1], [], []>} : vector<8x208xbf16>, vector<208x128xbf16>, vector<8x128xf32> -> vector<8x128xf32>
    %36 = arith.addf %30, %35 : vector<8x128xf32>
    %c0_31 = arith.constant 0 : index
    %c0_32 = arith.constant 0 : index
    %c20 = arith.constant 20 : index
    %c0_33 = arith.constant 0 : index
    %37 = vector.load %arg4[%c0_31, %c0_32, %c20, %c0_33] : memref<1x1x28x208xbf16, #tpu.memory_space<vmem>>, vector<1x1x8x208xbf16>
    %38 = vector.shape_cast %37 : vector<1x1x8x208xbf16> to vector<8x208xbf16>
    %c5 = arith.constant 5 : index
    %c0_34 = arith.constant 0 : index
    %c0_35 = arith.constant 0 : index
    %39 = vector.load %arg5[%c5, %c0_34, %c0_35] : memref<6x208x256xbf16, #tpu.memory_space<vmem>>, vector<1x208x128xbf16>
    %40 = vector.shape_cast %39 : vector<1x208x128xbf16> to vector<208x128xbf16>
    %cst_36 = arith.constant dense<0.000000e+00> : vector<8x128xf32>
    %41 = tpu.matmul %38, %40, %cst_36 {dimension_numbers = #tpu.dot_dimension_numbers<[1], [0], [0], [1], [0, 0, 1, 1], [], []>} : vector<8x208xbf16>, vector<208x128xbf16>, vector<8x128xf32> -> vector<8x128xf32>
    %42 = arith.addf %36, %41 : vector<8x128xf32>
    %c0_37 = arith.constant 0 : index
    %c0_38 = arith.constant 0 : index
    %43 = vector.load %arg6[%c0_37, %c0_38] : memref<1x256xf32, #tpu.memory_space<vmem>>, vector<1x128xf32>
    %44 = vector.broadcast %43 : vector<1x128xf32> to vector<8x128xf32>
    %45 = arith.mulf %42, %44 : vector<8x128xf32>
    %c0_39 = arith.constant 0 : index
    %c0_40 = arith.constant 0 : index
    %46 = vector.load %arg7[%c0_39, %c0_40] : memref<1x256xf32, #tpu.memory_space<vmem>>, vector<1x128xf32>
    %47 = vector.broadcast %46 : vector<1x128xf32> to vector<8x128xf32>
    %48 = arith.addf %45, %47 : vector<8x128xf32>
    %cst_41 = arith.constant 0.000000e+00 : f32
    %49 = vector.shape_cast %7 : vector<8x1xi1> to vector<8x1xi1>
    %50 = vector.broadcast %49 : vector<8x1xi1> to vector<8x128xi1>
    %51 = vector.broadcast %cst_41 : f32 to vector<8x128xf32>
    %52 = arith.select %50, %48, %51 : vector<8x128xi1>, vector<8x128xf32>
    %cst_42 = arith.constant 0.000000e+00 : f32
    %cst_43 = arith.constant 2.000000e+01 : f32
    %53 = vector.broadcast %cst_42 : f32 to vector<8x128xf32>
    %54 = arith.maximumf %53, %52 : vector<8x128xf32>
    %55 = vector.broadcast %cst_43 : f32 to vector<8x128xf32>
    %56 = arith.minimumf %55, %54 : vector<8x128xf32>
    %57 = arith.truncf %56 : vector<8x128xf32> to vector<8x128xbf16>
    %c0_44 = arith.constant 0 : index
    %c0_45 = arith.constant 0 : index
    %c0_46 = arith.constant 0 : index
    %58 = vector.load %arg8[%c0_44, %c0_45, %c0_46] : memref<1x8x256xbf16, #tpu.memory_space<vmem>>, vector<1x8x128xbf16>
    %59 = vector.shape_cast %58 : vector<1x8x128xbf16> to vector<8x128xbf16>
    %60 = vector.shape_cast %57 : vector<8x128xbf16> to vector<1x8x128xbf16>
    tpu.vector_store %arg8[%c0_44, %c0_45, %c0_46], %60 {strides = array<i32>} : memref<1x8x256xbf16, #tpu.memory_space<vmem>>, vector<1x8x128xbf16>,
    %c0_47 = arith.constant 0 : index
    %c0_48 = arith.constant 0 : index
    %c0_49 = arith.constant 0 : index
    %c0_50 = arith.constant 0 : index
    %61 = vector.load %arg4[%c0_47, %c0_48, %c0_49, %c0_50] : memref<1x1x28x208xbf16, #tpu.memory_space<vmem>>, vector<1x1x8x208xbf16>
    %62 = vector.shape_cast %61 : vector<1x1x8x208xbf16> to vector<8x208xbf16>
    %c0_51 = arith.constant 0 : index
    %c0_52 = arith.constant 0 : index
    %c128 = arith.constant 128 : index
    %63 = vector.load %arg5[%c0_51, %c0_52, %c128] : memref<6x208x256xbf16, #tpu.memory_space<vmem>>, vector<1x208x128xbf16>
    %64 = vector.shape_cast %63 : vector<1x208x128xbf16> to vector<208x128xbf16>
    %cst_53 = arith.constant dense<0.000000e+00> : vector<8x128xf32>
    %65 = tpu.matmul %62, %64, %cst_53 {dimension_numbers = #tpu.dot_dimension_numbers<[1], [0], [0], [1], [0, 0, 1, 1], [], []>} : vector<8x208xbf16>, vector<208x128xbf16>, vector<8x128xf32> -> vector<8x128xf32>
    %c0_54 = arith.constant 0 : index
    %c0_55 = arith.constant 0 : index
    %c4_56 = arith.constant 4 : index
    %c0_57 = arith.constant 0 : index
    %66 = vector.load %arg4[%c0_54, %c0_55, %c4_56, %c0_57] : memref<1x1x28x208xbf16, #tpu.memory_space<vmem>>, vector<1x1x8x208xbf16>
    %67 = vector.shape_cast %66 : vector<1x1x8x208xbf16> to vector<8x208xbf16>
    %c1_58 = arith.constant 1 : index
    %c0_59 = arith.constant 0 : index
    %c128_60 = arith.constant 128 : index
    %68 = vector.load %arg5[%c1_58, %c0_59, %c128_60] : memref<6x208x256xbf16, #tpu.memory_space<vmem>>, vector<1x208x128xbf16>
    %69 = vector.shape_cast %68 : vector<1x208x128xbf16> to vector<208x128xbf16>
    %cst_61 = arith.constant dense<0.000000e+00> : vector<8x128xf32>
    %70 = tpu.matmul %67, %69, %cst_61 {dimension_numbers = #tpu.dot_dimension_numbers<[1], [0], [0], [1], [0, 0, 1, 1], [], []>} : vector<8x208xbf16>, vector<208x128xbf16>, vector<8x128xf32> -> vector<8x128xf32>
    %71 = arith.addf %65, %70 : vector<8x128xf32>
    %c0_62 = arith.constant 0 : index
    %c0_63 = arith.constant 0 : index
    %c8_64 = arith.constant 8 : index
    %c0_65 = arith.constant 0 : index
    %72 = vector.load %arg4[%c0_62, %c0_63, %c8_64, %c0_65] : memref<1x1x28x208xbf16, #tpu.memory_space<vmem>>, vector<1x1x8x208xbf16>
    %73 = vector.shape_cast %72 : vector<1x1x8x208xbf16> to vector<8x208xbf16>
    %c2_66 = arith.constant 2 : index
    %c0_67 = arith.constant 0 : index
    %c128_68 = arith.constant 128 : index
    %74 = vector.load %arg5[%c2_66, %c0_67, %c128_68] : memref<6x208x256xbf16, #tpu.memory_space<vmem>>, vector<1x208x128xbf16>
    %75 = vector.shape_cast %74 : vector<1x208x128xbf16> to vector<208x128xbf16>
    %cst_69 = arith.constant dense<0.000000e+00> : vector<8x128xf32>
    %76 = tpu.matmul %73, %75, %cst_69 {dimension_numbers = #tpu.dot_dimension_numbers<[1], [0], [0], [1], [0, 0, 1, 1], [], []>} : vector<8x208xbf16>, vector<208x128xbf16>, vector<8x128xf32> -> vector<8x128xf32>
    %77 = arith.addf %71, %76 : vector<8x128xf32>
    %c0_70 = arith.constant 0 : index
    %c0_71 = arith.constant 0 : index
    %c12_72 = arith.constant 12 : index
    %c0_73 = arith.constant 0 : index
    %78 = vector.load %arg4[%c0_70, %c0_71, %c12_72, %c0_73] : memref<1x1x28x208xbf16, #tpu.memory_space<vmem>>, vector<1x1x8x208xbf16>
    %79 = vector.shape_cast %78 : vector<1x1x8x208xbf16> to vector<8x208xbf16>
    %c3_74 = arith.constant 3 : index
    %c0_75 = arith.constant 0 : index
    %c128_76 = arith.constant 128 : index
    %80 = vector.load %arg5[%c3_74, %c0_75, %c128_76] : memref<6x208x256xbf16, #tpu.memory_space<vmem>>, vector<1x208x128xbf16>
    %81 = vector.shape_cast %80 : vector<1x208x128xbf16> to vector<208x128xbf16>
    %cst_77 = arith.constant dense<0.000000e+00> : vector<8x128xf32>
    %82 = tpu.matmul %79, %81, %cst_77 {dimension_numbers = #tpu.dot_dimension_numbers<[1], [0], [0], [1], [0, 0, 1, 1], [], []>} : vector<8x208xbf16>, vector<208x128xbf16>, vector<8x128xf32> -> vector<8x128xf32>
    %83 = arith.addf %77, %82 : vector<8x128xf32>
    %c0_78 = arith.constant 0 : index
    %c0_79 = arith.constant 0 : index
    %c16_80 = arith.constant 16 : index
    %c0_81 = arith.constant 0 : index
    %84 = vector.load %arg4[%c0_78, %c0_79, %c16_80, %c0_81] : memref<1x1x28x208xbf16, #tpu.memory_space<vmem>>, vector<1x1x8x208xbf16>
    %85 = vector.shape_cast %84 : vector<1x1x8x208xbf16> to vector<8x208xbf16>
    %c4_82 = arith.constant 4 : index
    %c0_83 = arith.constant 0 : index
    %c128_84 = arith.constant 128 : index
    %86 = vector.load %arg5[%c4_82, %c0_83, %c128_84] : memref<6x208x256xbf16, #tpu.memory_space<vmem>>, vector<1x208x128xbf16>
    %87 = vector.shape_cast %86 : vector<1x208x128xbf16> to vector<208x128xbf16>
    %cst_85 = arith.constant dense<0.000000e+00> : vector<8x128xf32>
    %88 = tpu.matmul %85, %87, %cst_85 {dimension_numbers = #tpu.dot_dimension_numbers<[1], [0], [0], [1], [0, 0, 1, 1], [], []>} : vector<8x208xbf16>, vector<208x128xbf16>, vector<8x128xf32> -> vector<8x128xf32>
    %89 = arith.addf %83, %88 : vector<8x128xf32>
    %c0_86 = arith.constant 0 : index
    %c0_87 = arith.constant 0 : index
    %c20_88 = arith.constant 20 : index
    %c0_89 = arith.constant 0 : index
    %90 = vector.load %arg4[%c0_86, %c0_87, %c20_88, %c0_89] : memref<1x1x28x208xbf16, #tpu.memory_space<vmem>>, vector<1x1x8x208xbf16>
    %91 = vector.shape_cast %90 : vector<1x1x8x208xbf16> to vector<8x208xbf16>
    %c5_90 = arith.constant 5 : index
    %c0_91 = arith.constant 0 : index
    %c128_92 = arith.constant 128 : index
    %92 = vector.load %arg5[%c5_90, %c0_91, %c128_92] : memref<6x208x256xbf16, #tpu.memory_space<vmem>>, vector<1x208x128xbf16>
    %93 = vector.shape_cast %92 : vector<1x208x128xbf16> to vector<208x128xbf16>
    %cst_93 = arith.constant dense<0.000000e+00> : vector<8x128xf32>
    %94 = tpu.matmul %91, %93, %cst_93 {dimension_numbers = #tpu.dot_dimension_numbers<[1], [0], [0], [1], [0, 0, 1, 1], [], []>} : vector<8x208xbf16>, vector<208x128xbf16>, vector<8x128xf32> -> vector<8x128xf32>
    %95 = arith.addf %89, %94 : vector<8x128xf32>
    %c0_94 = arith.constant 0 : index
    %c128_95 = arith.constant 128 : index
    %96 = vector.load %arg6[%c0_94, %c128_95] : memref<1x256xf32, #tpu.memory_space<vmem>>, vector<1x128xf32>
    %97 = vector.broadcast %96 : vector<1x128xf32> to vector<8x128xf32>
    %98 = arith.mulf %95, %97 : vector<8x128xf32>
    %c0_96 = arith.constant 0 : index
    %c128_97 = arith.constant 128 : index
    %99 = vector.load %arg7[%c0_96, %c128_97] : memref<1x256xf32, #tpu.memory_space<vmem>>, vector<1x128xf32>
    %100 = vector.broadcast %99 : vector<1x128xf32> to vector<8x128xf32>
    %101 = arith.addf %98, %100 : vector<8x128xf32>
    %cst_98 = arith.constant 0.000000e+00 : f32
    %102 = vector.shape_cast %7 : vector<8x1xi1> to vector<8x1xi1>
    %103 = vector.broadcast %102 : vector<8x1xi1> to vector<8x128xi1>
    %104 = vector.broadcast %cst_98 : f32 to vector<8x128xf32>
    %105 = arith.select %103, %101, %104 : vector<8x128xi1>, vector<8x128xf32>
    %cst_99 = arith.constant 0.000000e+00 : f32
    %cst_100 = arith.constant 2.000000e+01 : f32
    %106 = vector.broadcast %cst_99 : f32 to vector<8x128xf32>
    %107 = arith.maximumf %106, %105 : vector<8x128xf32>
    %108 = vector.broadcast %cst_100 : f32 to vector<8x128xf32>
    %109 = arith.minimumf %108, %107 : vector<8x128xf32>
    %110 = arith.truncf %109 : vector<8x128xf32> to vector<8x128xbf16>
    %c0_101 = arith.constant 0 : index
    %c0_102 = arith.constant 0 : index
    %c128_103 = arith.constant 128 : index
    %111 = vector.load %arg8[%c0_101, %c0_102, %c128_103] : memref<1x8x256xbf16, #tpu.memory_space<vmem>>, vector<1x8x128xbf16>
    %112 = vector.shape_cast %111 : vector<1x8x128xbf16> to vector<8x128xbf16>
    %113 = vector.shape_cast %110 : vector<8x128xbf16> to vector<1x8x128xbf16>
    tpu.vector_store %arg8[%c0_101, %c0_102, %c128_103], %113 {strides = array<i32>} : memref<1x8x256xbf16, #tpu.memory_space<vmem>>, vector<1x8x128xbf16>,
    return
  }
  func.func @transform_0(%arg0: i32, %arg1: i32, %arg2: i32, %arg3: memref<2xi32, #tpu.memory_space<smem>>) -> (i32, i32, i32, i32) {
    %c0_i32 = arith.constant 0 : i32
    %c0_i32_0 = arith.constant 0 : i32
    %c0_i32_1 = arith.constant 0 : i32
    return %arg1, %arg2, %c0_i32, %c0_i32_0 : i32, i32, i32, i32
  }
  func.func @transform_1(%arg0: i32, %arg1: i32, %arg2: i32, %arg3: memref<2xi32, #tpu.memory_space<smem>>) -> (i32, i32, i32) {
    %c0_i32 = arith.constant 0 : i32
    %c0_i32_0 = arith.constant 0 : i32
    %c0_i32_1 = arith.constant 0 : i32
    return %c0_i32, %c0_i32_0, %arg0 : i32, i32, i32
  }
  func.func @transform_2(%arg0: i32, %arg1: i32, %arg2: i32, %arg3: memref<2xi32, #tpu.memory_space<smem>>) -> (i32, i32) {
    %c0_i32 = arith.constant 0 : i32
    %c0_i32_0 = arith.constant 0 : i32
    return %c0_i32, %arg0 : i32, i32
  }
  func.func @transform_3(%arg0: i32, %arg1: i32, %arg2: i32, %arg3: memref<2xi32, #tpu.memory_space<smem>>) -> (i32, i32) {
    %c0_i32 = arith.constant 0 : i32
    %c0_i32_0 = arith.constant 0 : i32
    return %c0_i32, %arg0 : i32, i32
  }
  func.func @transform_4(%arg0: i32, %arg1: i32, %arg2: i32, %arg3: memref<2xi32, #tpu.memory_space<smem>>) -> (i32, i32, i32) {
    %c0_i32 = arith.constant 0 : i32
    return %arg1, %arg2, %arg0 : i32, i32, i32
  }
}

</mosaic_0001>

<bundles_post_ra>
// kernel: tpu_custom_call.1
= control target key start
LH: loop header
LB: loop body
LE: loop exit
PB: predicated region body
PF: predicated region fallthrough
CT: control target
= control target key end

     0   :  { %s3395_s0 = inlined_call_operand.vmem [shape: s32[2], index: 0, kind: input, shape index: {}]   ;;  %s3396_s1 = inlined_call_operand.vmem [shape: bf16[2,1,28,208], index: 1, kind: input, shape index: {}]   ;;  %s3397_s2 = inlined_call_operand.hbm [shape: bf16[6,208,256], index: 2, kind: input, shape index: {}]   ;;  %s3398_s3 = inlined_call_operand.vmem [shape: f32[1,256], index: 3, kind: input, shape index: {}]   ;;  %s3399_s4 = inlined_call_operand.vmem [shape: f32[1,256], index: 4, kind: input, shape index: {}]   ;;  %s3400_s5 = inlined_call_operand.hbm [shape: bf16[2,8,256], index: 5, kind: output, shape index: {}]  }
   0x1   :  { %s10_s20 = sshll.u32 %s3395_s0, 4  ;;  %s11_s20 = int_to_ptr.vmem [resolvable:$true] %s10_s20 }
   0x2   :  { %s2860_s21 = scalar_lea.vmem %s11_s20, 16  ;;  %p2865_p1 = scmp.lt.s32.totalorder %s11_s20, %s11_s20 }
   0x3   :  { %p2861_p0 = scmp.ne.s32.totalorder %s11_s20, %s2860_s21  ;;  %p2866_p2 = scmp.lt.s32.totalorder %s2860_s21, %s2860_s21 }
   0x5   :  { %p2867_p3 = por %p2866_p2, %p2865_p1 }
   0x7   :  { %p2868_p4 = pnand %p2867_p3, %p2861_p0 }
   0x9   :  { %2871 = shalt.err (!%p2868_p4)  }
   0xa   :  { %s2982_s22 = smov [#allocation3]  }
   0xb   :  { %13 = dma.vmem_to_smem %s11_s20, 16, %s2982_s22, [#allocation2] }
   0xc   :  { %2948 = dma.done.wait [#allocation2], 16 }
   0xd   :  { %2949 = vsyncadd [#allocation2], 4294967280 }
   0xe   :  { %15 = sfence }
   0xf   :  { %16 = vsyncpa [#allocation5], 0 }
  0x10   :  { %17 = vsyncpa [#allocation6], 0 }
  0x11   :  { %19 = vsyncpa [#allocation6 + $0x1], 0  ;;  %s3021_s23 = smov 0   ;;  %s3023_s24 = smov 0  }
  0x12   :  { %s3025_s0 = smov 0   ;;  %s3027_s25 = smov 0  }
  0x13   :  { %s3029_s26 = smov 0   ;;  %s3031_s27 = smov 0  }
  0x14 LB: > { %s2395_s28 = sadd.s32 4294967295, %s2980_s27   ;;  %s2396_s29 = sadd.s32 4294967294, %s2980_s27   ;;  %s2980_s27 = sphi %s3031_s27, %s25_s27   ;;  %s2976_s26 = sphi %s3029_s26, %s3411_s26   ;;  %s2972_s25 = sphi %s3027_s25, %s3410_s25   ;;  %s2968_s0 = sphi %s3025_s0, %s3409_s0   ;;  %s2964_s24 = sphi %s3023_s24, %s3408_s24   ;;  %s2960_s23 = sphi %s3021_s23, %s3407_s23  }
  0x15   : > { %s40_s30 = sadd.s32 1, %s2976_s26  ;;  %s161_s6 = sadd.s32 1, %s2968_s0 }
  0x16   : > { %p42_p5 = scmp.ge.s32.totalorder %s40_s30, 2  ;;  %p171_p6 = scmp.ne.s32.totalorder %s2968_s0, %s2964_s24 }
  0x17   : > { %p172_p7 = scmp.eq.s32.totalorder %s2395_s28, 1  ;;  %p177_p8 = scmp.ne.s32.totalorder %s2964_s24, %s2960_s23 }
  0x18   : > { %s3413_s30 = smov (%p42_p5, %s40_s30), 0  ;;  %p178_p10 = scmp.eq.s32.totalorder %s2396_s29, 1 }
  0x19   : > { %p3061_p9 = por %p172_p7, %p171_p6  ;;  %s154_s8 = ssub.s32 %s2976_s26, %s3413_s30 }
  0x1a   : > { %p2397_p11 = scmp.ge.s32.totalorder %s2980_s27, 1  ;;  %p159_p12 = scmp.eq.s32.totalorder %s154_s8, 0 }
  0x1b   : > { %p3068_p13 = por %p178_p10, %p177_p8  ;;  %p185_p0 = scmp.lt.s32.totalorder %s2980_s27, 3 }
  0x1c   : > { %s3074_s10 = scalar_select %p159_p12, %s2968_s0, %s161_s6  }
  0x1d   : > { %p3076_p1 = pnand %p2397_p11, %p185_p0  ;;  %p3080_p2 = scmp.eq.s32.totalorder %s2395_s28, 0 }
  0x1e   : > { %s2983_s13 = smov [#allocation4]  }
  0x1f   : > { %p2616_p3 = pneg %p3076_p1  ;;  %s200_s14 = sshll.u32 %s2983_s13, 4  ;;  %s201_s14 = int_to_ptr.vmem [resolvable:$true] %s200_s14 }
  0x20   : > { %s2883_s15 = scalar_lea.vmem %s201_s14, 19968  ;;  %p2891_p10 = scmp.lt.s32.totalorder %s201_s14, %s201_s14 }
  0x21   : > { %p2617_p4 = pnand %p3080_p2, %p2616_p3  ;;  %p2884_p6 = scmp.ne.s32.totalorder %s201_s14, %s2883_s15 }
  0x22   : > { %p2892_p11 = scmp.lt.s32.totalorder %s2883_s15, %s2883_s15 }
  0x23   : > { %p2874_p5 = pneg %p2617_p4 }
  0x24   : > { %p2893_p12 = por %p2892_p11, %p2891_p10 }
  0x25   : > { %p2886_p7 = pnand %p2884_p6, %p2874_p5 }
  0x27   : > { %p2887_p8 = pneg %p2886_p7 }
  0x29   : > { %p2894_p0 = pnand %p2893_p12, %p2887_p8 }
  0x2b   : > { %2897 = shalt.err (!%p2894_p0)
}
  0x2c   : > { %s2984_s16 = smov 128   ;;  %s2985_s17 = smov 8  }
  0x2d   : > { %2619 = dma.hbm_to_vmem [thread:$0]  (!%p2617_p4), %s3397_s2, 19968, %s201_s14, [#allocation5], %s2984_s16, %s2984_s16, %s2985_s17  }
  0x2e   : > { %244 = sbr.rel (%p3076_p1) target bundleno = 586 (0x24a), region = 36 }
  0x33   : > { %2951 = dma.done.wait (%p3080_p2), [#allocation5], 19968  }
  0x34   : > { %2953 = vsyncadd (%p3080_p2), [#allocation5], 4294947328  ;;  %v2986_v0 = vmov 0   ;;  %v2680_v1 = vld [vmem:[#allocation4 + $0x140] ss:$8 sps:$4 sm:$0xff]   ;;  %p282_p1 = scmp.lt.s32.totalorder %s2972_s25, 1 }
  0x35   : > { %461 = vmatprep.subr.bf16.mxu0 %v2986_v0  ;;  %588 = vmatprep.subr.bf16.mxu1 %v2986_v0  ;;  %v2681_v2 = vld [vmem:[#allocation4 + $0x70] ss:$8 sps:$4 sm:$0xff]   ;;  %v2683_v4 = vld [vmem:[#allocation4 + $0x60] ss:$8 sps:$4 sm:$0xff]   ;;  %vm457_vm0 = vcmask 654336   ;;  %s304_s6 = sld [smem:[#allocation3 + %s2972_s25]] }
  0x36   : > { %462 = vmatpush1.bf16.msra.mxu0 %v2680_v1  ;;  %v2682_v3 = vld [vmem:[#allocation4 + $0x130] ss:$8 sps:$4 sm:$0xff]   ;;  %589 = vmatpush1.bf16.msra.mxu1 %v2681_v2  ;;  %v2684_v5 = vld [vmem:[#allocation4 + $0x120] ss:$8 sps:$4 sm:$0xff]   ;;  %s283_s20 = scalar_select %p282_p1, %s2972_s25, 1 }
  0x37   : > { %463 = vmatprep.subr.bf16.mxu0 %v2986_v0  ;;  %590 = vmatprep.subr.bf16.mxu1 %v2986_v0  ;;  %v2685_v6 = vld [vmem:[#allocation4 + $0x50] ss:$8 sps:$4 sm:$0xff]   ;;  %v2687_v8 = vld [vmem:[#allocation4 + $0x40] ss:$8 sps:$4 sm:$0xff]   ;;  %s279_s14 = sand.u32 1, %s2964_s24   ;;  %s2987_s12 = smov [#allocation7]  }
  0x38   : > { %v2686_v7 = vld [vmem:[#allocation4 + $0x110] ss:$8 sps:$4 sm:$0xff]   ;;  %v2688_v9 = vld [vmem:[#allocation4 + $0x100] ss:$8 sps:$4 sm:$0xff]   ;;  %s2608_s21 = sshll.u32 %s283_s20, 5  ;;  %s2404_s15 = sshll.u32 %s279_s14, 3 }
  0x39   : > { %v2689_v10 = vld [vmem:[#allocation4 + $0x30] ss:$8 sps:$4 sm:$0xff]   ;;  %v2691_v12 = vld [vmem:[#allocation4 + $0x20] ss:$8 sps:$4 sm:$0xff]   ;;  %s3115_s29 = scalar_lea.vmem %s3396_s1, %s2608_s21  ;;  %s3342_s16 = scalar_lea.vmem [#allocation7], %s2404_s15 }
  0x3a   : > { %464 = vmatpush1.bf16.msra.mxu0 %v2682_v3  ;;  %591 = vmatpush1.bf16.msra.mxu1 %v2683_v4  ;;  %v2690_v11 = vld [vmem:[#allocation4 + $0xf0] ss:$8 sps:$4 sm:$0xff]   ;;  %v2692_v13 = vld [vmem:[#allocation4 + $0xe0] ss:$8 sps:$4 sm:$0xff]   ;;  %s2609_s21 = sshll.u32 %s2972_s25, 7  ;;  %s2273_s22 = sshll.u32 %s3342_s16, 4  ;;  %s2274_s22 = int_to_ptr.vmem [resolvable:$true] %s2273_s22 }
  0x3b   : > { %465 = vmatprep.subr.bf16.mxu0 %v2986_v0  ;;  %592 = vmatprep.subr.bf16.mxu1 %v2986_v0  ;;  %v2693_v14 = vld [vmem:[#allocation4 + $0x10] ss:$8 sps:$4 sm:$0xff]   ;;  %v312_v16 = vld [vmem:[%s3115_s29] sm:$0xff]  ;;  %v3144_v38 = vld [vmem:[%s3115_s29 + $0x8] sm:$0xff]  ;;  %s2255_s8 = scalar_lea.sflag [#allocation6], %s279_s14  ;;  %s2898_s11 = scalar_lea.vmem %s2274_s22, 128 }
  0x3c   : > { %v2694_v15 = vld [vmem:[#allocation4 + $0xd0] ss:$8 sps:$4 sm:$0xff]   ;;  %v2695_v17 = vld [vmem:[#allocation4] ss:$8 sps:$4 sm:$0xff]   ;;  %v3121_v19 = vcombine.high %v312_v16, %v312_v16  ;;  %v3138_v33 = vcombine.low %v312_v16, %v312_v16  ;;  %v3149_v39 = vcombine.high %v3144_v38, %v3144_v38  ;;  %v3185_v4 = vcombine.low %v3144_v38, %v3144_v38  ;;  %p2899_p2 = scmp.ne.s32.totalorder %s2274_s22, %s2898_s11  ;;  %s2902_s13 = sshll.u32 %s2987_s12, 4  ;;  %s2903_s13 = int_to_ptr.vmem [resolvable:$false] %s2902_s13 }
  0x3d   : > { %v2708_v18 = vld [vmem:[%s3115_s29 + $0x4] ss:$8 sps:$4 sm:$0x3c]   ;;  %v2696_v21 = vld [vmem:[#allocation4 + $0x190] ss:$8 sps:$4 sm:$0xff]   ;;  %s2904_s25 = scalar_lea.vmem %s2903_s13, 256  ;;  %p2905_p5 = scmp.lt.s32.totalorder %s2274_s22, %s2903_s13 }
  0x3e   : > { %466 = vmatpush1.bf16.msra.mxu0 %v2684_v5  ;;  %593 = vmatpush1.bf16.msra.mxu1 %v2685_v6  ;;  %v377_v20 = vrot.slane %v2708_v18, 2  ;;  %v2697_v22 = vld [vmem:[#allocation4 + $0xc0] ss:$8 sps:$4 sm:$0xff]   ;;  %v2699_v24 = vld [vmem:[#allocation4 + $0xb0] ss:$8 sps:$4 sm:$0xff]   ;;  %p2900_p3 = pnand %p2899_p2, %p3061_p9  ;;  %p2906_p6 = scmp.lt.s32.totalorder %s2904_s25, %s2898_s11 }
  0x3f   : > { %467 = vmatprep.subr.bf16.mxu0 %v2986_v0  ;;  %594 = vmatprep.subr.bf16.mxu1 %v2986_v0  ;;  %v2698_v23 = vld [vmem:[#allocation4 + $0x180] ss:$8 sps:$4 sm:$0xff]   ;;  %v2700_v25 = vld [vmem:[#allocation4 + $0x170] ss:$8 sps:$4 sm:$0xff]  }
  0x40   : > { %2438 = vmatprep.mubr.msk.bf16.mxu1 %vm457_vm0, %v3121_v19  ;;  %2422 = vmatprep.mubr.msk.bf16.mxu0 %vm457_vm0, %v377_v20  ;;  %v2701_v26 = vld [vmem:[#allocation4 + $0xa0] ss:$8 sps:$4 sm:$0xff]   ;;  %v2703_v28 = vld [vmem:[#allocation4 + $0x90] ss:$8 sps:$4 sm:$0xff]   ;;  %p2901_p4 = pneg %p2900_p3  ;;  %p2907_p7 = por %p2906_p6, %p2905_p5 }
  0x41   : > { %v2702_v27 = vld [vmem:[#allocation4 + $0x160] ss:$8 sps:$4 sm:$0xff]   ;;  %v2704_v30 = vld [vmem:[#allocation4 + $0x150] ss:$8 sps:$4 sm:$0xff]  }
  0x42   : > { %468 = vmatpush1.bf16.msra.mxu0 %v2686_v7  ;;  %595 = vmatpush1.bf16.msra.mxu1 %v2687_v8  ;;  %v2706_v29 = vld [vmem:[%s3115_s29] ss:$8 sps:$4 sm:$0x3c]   ;;  %v2711_v34 = vld [vmem:[#allocation4 + $0x210] ss:$8 sps:$4 sm:$0xff]   ;;  %p2908_p8 = pnand %p2907_p7, %p2901_p4 }
  0x43   : > { %469 = vmatprep.subr.bf16.mxu0 %v2986_v0  ;;  %596 = vmatprep.subr.bf16.mxu1 %v2986_v0  ;;  %v2705_v31 = vld [vmem:[#allocation4 + $0x80] ss:$8 sps:$4 sm:$0xff]   ;;  %v376_v32 = vrot.slane %v2706_v29, 2  ;;  %v2714_v37 = vld [vmem:[#allocation4 + $0x2d0] ss:$8 sps:$4 sm:$0xff]  }
  0x44   : > { %v2712_v35 = vld [vmem:[#allocation4 + $0x2e0] ss:$8 sps:$4 sm:$0xff]   ;;  %v2738_v40 = vld [vmem:[%s3115_s29 + $0xc] ss:$8 sps:$4 sm:$0x3c]  }
  0x45   : > { %v2713_v36 = vld [vmem:[#allocation4 + $0x200] ss:$8 sps:$4 sm:$0xff]   ;;  %v822_v41 = vrot.slane %v2738_v40, 2  ;;  %v2715_v42 = vld [vmem:[#allocation4 + $0x1f0] ss:$8 sps:$4 sm:$0xff]  }
  0x46   : > { %470 = vmatpush1.bf16.msra.mxu0 %v2688_v9  ;;  %597 = vmatpush1.bf16.msra.mxu1 %v2689_v10  ;;  %v2716_v43 = vld [vmem:[#allocation4 + $0x2c0] ss:$8 sps:$4 sm:$0xff]   ;;  %v2718_v45 = vld [vmem:[#allocation4 + $0x2b0] ss:$8 sps:$4 sm:$0xff]   ;;  %v2773_v40 = vld [vmem:[#allocation4 + $0x144] ss:$8 sps:$4 sm:$0xff]  }
  0x47   : > { %471 = vmatprep.subr.bf16.mxu0 %v2986_v0  ;;  %598 = vmatprep.subr.bf16.mxu1 %v2986_v0  ;;  %v2717_v44 = vld [vmem:[#allocation4 + $0x1e0] ss:$8 sps:$4 sm:$0xff]   ;;  %v2719_v46 = vld [vmem:[#allocation4 + $0x1d0] ss:$8 sps:$4 sm:$0xff]  }
  0x48   : > { %v2720_v47 = vld [vmem:[#allocation4 + $0x2a0] ss:$8 sps:$4 sm:$0xff]   ;;  %v2722_v49 = vld [vmem:[#allocation4 + $0x290] ss:$8 sps:$4 sm:$0xff]  }
  0x49   : > { %v2721_v48 = vld [vmem:[#allocation4 + $0x1c0] ss:$8 sps:$4 sm:$0xff]   ;;  %v2723_v50 = vld [vmem:[#allocation4 + $0x1b0] ss:$8 sps:$4 sm:$0xff]  }
  0x4a   : > { %472 = vmatpush1.bf16.msra.mxu0 %v2690_v11  ;;  %599 = vmatpush1.bf16.msra.mxu1 %v2691_v12  ;;  %v2724_v51 = vld [vmem:[#allocation4 + $0x280] ss:$8 sps:$4 sm:$0xff]   ;;  %v2726_v53 = vld [vmem:[#allocation4 + $0x270] ss:$8 sps:$4 sm:$0xff]  }
  0x4b   : > { %473 = vmatprep.subr.bf16.mxu0 %v2986_v0  ;;  %600 = vmatprep.subr.bf16.mxu1 %v2986_v0  ;;  %v2725_v52 = vld [vmem:[#allocation4 + $0x1a0] ss:$8 sps:$4 sm:$0xff]   ;;  %v2728_v55 = vld [vmem:[#allocation4 + $0x330] ss:$8 sps:$4 sm:$0xff]  }
  0x4c   : > { %v2727_v54 = vld [vmem:[#allocation4 + $0x260] ss:$8 sps:$4 sm:$0xff]   ;;  %v2729_v56 = vld [vmem:[#allocation4 + $0x250] ss:$8 sps:$4 sm:$0xff]  }
  0x4d   : > { %v2730_v57 = vld [vmem:[#allocation4 + $0x320] ss:$8 sps:$4 sm:$0xff]   ;;  %v2732_v59 = vld [vmem:[#allocation4 + $0x310] ss:$8 sps:$4 sm:$0xff]  }
  0x4e   : > { %474 = vmatpush1.bf16.msra.mxu0 %v2692_v13  ;;  %601 = vmatpush1.bf16.msra.mxu1 %v2693_v14  ;;  %v2731_v58 = vld [vmem:[#allocation4 + $0x240] ss:$8 sps:$4 sm:$0xff]   ;;  %v2733_v60 = vld [vmem:[#allocation4 + $0x230] ss:$8 sps:$4 sm:$0xff]  }
  0x4f   : > { %475 = vmatprep.subr.bf16.mxu0 %v2986_v0  ;;  %602 = vmatprep.subr.bf16.mxu1 %v2986_v0  ;;  %v2734_v61 = vld [vmem:[#allocation4 + $0x300] ss:$8 sps:$4 sm:$0xff]   ;;  %v2736_v1 = vld [vmem:[#allocation4 + $0x2f0] ss:$8 sps:$4 sm:$0xff]  }
  0x50   : > { %v2741_v62 = vld [vmem:[%s3115_s29 + $0x8] ss:$8 sps:$4 sm:$0x3c]   ;;  %v2769_v2 = vld [vmem:[%s3115_s29 + $0x14] ss:$8 sps:$4 sm:$0x3c]  }
  0x51   : > { %v2735_v63 = vld [vmem:[#allocation4 + $0x220] ss:$8 sps:$4 sm:$0xff]   ;;  %v3181_v3 = vld [vmem:[%s3115_s29 + $0x10] sm:$0xff]  ;;  %v821_v6 = vrot.slane %v2741_v62, 2  ;;  %v1140_v9 = vrot.slane %v2769_v2, 2 }
  0x52   : > { %476 = vmatpush1.bf16.msra.mxu0 %v2694_v15  ;;  %603 = vmatpush1.bf16.msra.mxu1 %v2695_v17  ;;  %v2742_v5 = vld [vmem:[#allocation4 + $0x3b0] ss:$8 sps:$4 sm:$0xff]   ;;  %v2743_v7 = vld [vmem:[#allocation4 + $0x480] ss:$8 sps:$4 sm:$0xff]   ;;  %v3191_v8 = vcombine.high %v3181_v3, %v3181_v3  ;;  %v2794_v62 = vld [vmem:[#allocation4 + $0xa4] ss:$8 sps:$4 sm:$0xff]  }
  0x53   : > { %483 = vmatprep.subr.bf16.mxu0 %v2986_v0  ;;  %610 = vmatprep.subr.bf16.mxu1 %v2986_v0  ;;  %v2744_v10 = vld [vmem:[#allocation4 + $0x3a0] ss:$8 sps:$4 sm:$0xff]   ;;  %v2745_v11 = vld [vmem:[#allocation4 + $0x470] ss:$8 sps:$4 sm:$0xff]  }
  0x54   : > { %v2746_v12 = vld [vmem:[#allocation4 + $0x390] ss:$8 sps:$4 sm:$0xff]   ;;  %v2747_v13 = vld [vmem:[#allocation4 + $0x460] ss:$8 sps:$4 sm:$0xff]  }
  0x55   : > { %v2748_v14 = vld [vmem:[#allocation4 + $0x380] ss:$8 sps:$4 sm:$0xff]   ;;  %v2749_v15 = vld [vmem:[#allocation4 + $0x450] ss:$8 sps:$4 sm:$0xff]  }
  0x56   : > { %484 = vmatpush2.bf16.msra.mxu0 %v2696_v21  ;;  %611 = vmatpush2.bf16.msra.mxu1 %v2697_v22  ;;  %v2750_v16 = vld [vmem:[#allocation4 + $0x370] ss:$8 sps:$4 sm:$0xff]   ;;  %v2751_v17 = vld [vmem:[#allocation4 + $0x440] ss:$8 sps:$4 sm:$0xff]  }
  0x57   : > { %485 = vmatprep.subr.bf16.mxu0 %v2986_v0  ;;  %612 = vmatprep.subr.bf16.mxu1 %v2986_v0  ;;  %v2752_v18 = vld [vmem:[#allocation4 + $0x360] ss:$8 sps:$4 sm:$0xff]   ;;  %v2753_v20 = vld [vmem:[#allocation4 + $0x430] ss:$8 sps:$4 sm:$0xff]  }
  0x58   : > { %v2754_v21 = vld [vmem:[#allocation4 + $0x350] ss:$8 sps:$4 sm:$0xff]   ;;  %v2755_v22 = vld [vmem:[#allocation4 + $0x420] ss:$8 sps:$4 sm:$0xff]  }
  0x59   : > { %v2762_v29 = vld [vmem:[#allocation4 + $0x3e0] ss:$8 sps:$4 sm:$0xff]  }
  0x5a   : > { %486 = vmatpush2.bf16.msra.mxu0 %v2698_v23  ;;  %613 = vmatpush2.bf16.msra.mxu1 %v2699_v24  ;;  %v2756_v23 = vld [vmem:[#allocation4 + $0x340] ss:$8 sps:$4 sm:$0xff]   ;;  %v2757_v24 = vld [vmem:[#allocation4 + $0x410] ss:$8 sps:$4 sm:$0xff]  }
  0x5b   : > { %487 = vmatprep.subr.bf16.mxu0 %v2986_v0  ;;  %614 = vmatprep.subr.bf16.mxu1 %v2986_v0  ;;  %v2801_v2 = vld [vmem:[%s3115_s29] ss:$8 sps:$4 sm:$0x3c]  }
  0x5e   : > { %488 = vmatpush2.bf16.msra.mxu0 %v2700_v25  ;;  %615 = vmatpush2.bf16.msra.mxu1 %v2701_v26  ;;  %v2758_v25 = vld [vmem:[#allocation4 + $0x400] ss:$8 sps:$4 sm:$0xff]   ;;  %v2759_v26 = vld [vmem:[#allocation4 + $0x4d0] ss:$8 sps:$4 sm:$0xff]  }
  0x5f   : > { %489 = vmatprep.subr.bf16.mxu0 %v2986_v0  ;;  %616 = vmatprep.subr.bf16.mxu1 %v2986_v0 }
  0x62   : > { %490 = vmatpush2.bf16.msra.mxu0 %v2702_v27  ;;  %617 = vmatpush2.bf16.msra.mxu1 %v2703_v28  ;;  %v2760_v27 = vld [vmem:[#allocation4 + $0x3f0] ss:$8 sps:$4 sm:$0xff]   ;;  %v2761_v28 = vld [vmem:[#allocation4 + $0x4c0] ss:$8 sps:$4 sm:$0xff]  }
  0x63   : > { %491 = vmatprep.subr.bf16.mxu0 %v2986_v0  ;;  %618 = vmatprep.subr.bf16.mxu1 %v2986_v0 }
  0x66   : > { %492 = vmatpush2.bf16.msra.mxu0 %v2704_v30  ;;  %619 = vmatpush2.bf16.msra.mxu1 %v2705_v31  ;;  %v2763_v30 = vld [vmem:[#allocation4 + $0x4b0] ss:$8 sps:$4 sm:$0xff]  }
  0x67   : > { %743 = vmatprep.subr.bf16.mxu0 %v2986_v0  ;;  %905 = vmatprep.subr.bf16.mxu1 %v2986_v0  ;;  %v2764_v31 = vld [vmem:[#allocation4 + $0x3d0] ss:$8 sps:$4 sm:$0xff]  }
  0x69   : > { %494 = vmatmul.mubr.bf16.vlgmr.msra.gmra.mxu0 %v376_v32  ;;  %621 = vmatmul.mubr.bf16.vlgmr.msra.gmra.mxu1 %v3138_v33  ;;  %v2772_v32 = vld [vmem:[%s3115_s29 + $0x10] ss:$8 sps:$4 sm:$0x3c]  }
  0x6a   : > { %744 = vmatpush1.bf16.msra.mxu0 %v2711_v34  ;;  %906 = vmatpush1.bf16.msra.mxu1 %v2712_v35  ;;  %v2765_v34 = vld [vmem:[#allocation4 + $0x4a0] ss:$8 sps:$4 sm:$0xff]   ;;  %v1139_v38 = vrot.slane %v2772_v32, 2 }
  0x6b   : > { %745 = vmatprep.subr.bf16.mxu0 %v2986_v0  ;;  %907 = vmatprep.subr.bf16.mxu1 %v2986_v0  ;;  %v2766_v35 = vld [vmem:[#allocation4 + $0x3c0] ss:$8 sps:$4 sm:$0xff]  }
  0x6c   : > { %2454 = vmatprep.mubr.msk.bf16.mxu0 %vm457_vm0, %v3149_v39  ;;  %2470 = vmatprep.mubr.msk.bf16.mxu1 %vm457_vm0, %v822_v41  ;;  %v3225_v41 = vcombine.low %v3181_v3, %v3181_v3  ;;  %v2797_v3 = vld [vmem:[#allocation4 + $0x154] ss:$8 sps:$4 sm:$0xff]  }
  0x6e   : > { %746 = vmatpush1.bf16.msra.mxu0 %v2713_v36  ;;  %908 = vmatpush1.bf16.msra.mxu1 %v2714_v37  ;;  %v2799_v36 = vld [vmem:[%s3115_s29 + $0x4] ss:$8 sps:$4 sm:$0x3c]   ;;  %v2767_v37 = vld [vmem:[#allocation4 + $0x490] ss:$8 sps:$4 sm:$0xff]  }
  0x6f   : > { %747 = vmatprep.subr.bf16.mxu0 %v2986_v0  ;;  %909 = vmatprep.subr.bf16.mxu1 %v2986_v0 }
  0x72   : > { %748 = vmatpush1.bf16.msra.mxu0 %v2715_v42  ;;  %910 = vmatpush1.bf16.msra.mxu1 %v2716_v43  ;;  %v2774_v42 = vld [vmem:[#allocation4 + $0x74] ss:$8 sps:$4 sm:$0xff]  }
  0x73   : > { %749 = vmatprep.subr.bf16.mxu0 %v2986_v0  ;;  %911 = vmatprep.subr.bf16.mxu1 %v2986_v0  ;;  %v2775_v43 = vld [vmem:[#allocation4 + $0x134] ss:$8 sps:$4 sm:$0xff]  }
  0x76   : > { %750 = vmatpush1.bf16.msra.mxu0 %v2717_v44  ;;  %912 = vmatpush1.bf16.msra.mxu1 %v2718_v45  ;;  %v1351_v44 = vrot.slane %v2799_v36, 2  ;;  %v2776_v45 = vld [vmem:[#allocation4 + $0x64] ss:$8 sps:$4 sm:$0xff]  }
  0x77   : > { %751 = vmatprep.subr.bf16.mxu0 %v2986_v0  ;;  %913 = vmatprep.subr.bf16.mxu1 %v2986_v0 }
  0x7a   : > { %752 = vmatpush1.bf16.msra.mxu0 %v2719_v46  ;;  %914 = vmatpush1.bf16.msra.mxu1 %v2720_v47  ;;  %v2777_v46 = vld [vmem:[#allocation4 + $0x124] ss:$8 sps:$4 sm:$0xff]   ;;  %v2778_v47 = vld [vmem:[#allocation4 + $0x54] ss:$8 sps:$4 sm:$0xff]  }
  0x7b   : > { %753 = vmatprep.subr.bf16.mxu0 %v2986_v0  ;;  %915 = vmatprep.subr.bf16.mxu1 %v2986_v0 }
  0x7e   : > { %754 = vmatpush1.bf16.msra.mxu0 %v2721_v48  ;;  %916 = vmatpush1.bf16.msra.mxu1 %v2722_v49  ;;  %v2779_v48 = vld [vmem:[#allocation4 + $0x114] ss:$8 sps:$4 sm:$0xff]   ;;  %v2780_v49 = vld [vmem:[#allocation4 + $0x44] ss:$8 sps:$4 sm:$0xff]  }
  0x7f   : > { %755 = vmatprep.subr.bf16.mxu0 %v2986_v0  ;;  %917 = vmatprep.subr.bf16.mxu1 %v2986_v0 }
  0x82   : > { %756 = vmatpush1.bf16.msra.mxu0 %v2723_v50  ;;  %918 = vmatpush1.bf16.msra.mxu1 %v2724_v51  ;;  %v2781_v50 = vld [vmem:[#allocation4 + $0x104] ss:$8 sps:$4 sm:$0xff]   ;;  %v2783_v51 = vld [vmem:[#allocation4 + $0xf4] ss:$8 sps:$4 sm:$0xff]  }
  0x83   : > { %757 = vmatprep.subr.bf16.mxu0 %v2986_v0  ;;  %919 = vmatprep.subr.bf16.mxu1 %v2986_v0 }
  0x86   : > { %758 = vmatpush1.bf16.msra.mxu0 %v2725_v52  ;;  %920 = vmatpush1.bf16.msra.mxu1 %v2726_v53  ;;  %v2784_v52 = vld [vmem:[#allocation4 + $0x24] ss:$8 sps:$4 sm:$0xff]  }
  0x87   : > { %765 = vmatprep.subr.bf16.mxu0 %v2986_v0  ;;  %927 = vmatprep.subr.bf16.mxu1 %v2986_v0  ;;  %v2785_v53 = vld [vmem:[#allocation4 + $0xe4] ss:$8 sps:$4 sm:$0xff]  }
  0x8a   : > { %766 = vmatpush2.bf16.msra.mxu0 %v2727_v54  ;;  %928 = vmatpush2.bf16.msra.mxu1 %v2728_v55  ;;  %v2786_v54 = vld [vmem:[#allocation4 + $0x14] ss:$8 sps:$4 sm:$0xff]  }
  0x8b   : > { %767 = vmatprep.subr.bf16.mxu0 %v2986_v0  ;;  %929 = vmatprep.subr.bf16.mxu1 %v2986_v0  ;;  %v2787_v55 = vld [vmem:[#allocation4 + $0xd4] ss:$8 sps:$4 sm:$0xff]  }
  0x8e   : > { %768 = vmatpush2.bf16.msra.mxu0 %v2729_v56  ;;  %930 = vmatpush2.bf16.msra.mxu1 %v2730_v57  ;;  %v2788_v56 = vld [vmem:[#allocation4 + $0x4] ss:$8 sps:$4 sm:$0xff]   ;;  %v2789_v57 = vld [vmem:[#allocation4 + $0x194] ss:$8 sps:$4 sm:$0xff]  }
  0x8f   : > { %769 = vmatprep.subr.bf16.mxu0 %v2986_v0  ;;  %931 = vmatprep.subr.bf16.mxu1 %v2986_v0 }
  0x92   : > { %770 = vmatpush2.bf16.msra.mxu0 %v2731_v58  ;;  %932 = vmatpush2.bf16.msra.mxu1 %v2732_v59  ;;  %v2790_v58 = vld [vmem:[#allocation4 + $0xc4] ss:$8 sps:$4 sm:$0xff]  }
  0x93   : > { %771 = vmatprep.subr.bf16.mxu0 %v2986_v0  ;;  %933 = vmatprep.subr.bf16.mxu1 %v2986_v0  ;;  %v2791_v59 = vld [vmem:[#allocation4 + $0x184] ss:$8 sps:$4 sm:$0xff]  }
  0x96   : > { %772 = vmatpush2.bf16.msra.mxu0 %v2733_v60  ;;  %934 = vmatpush2.bf16.msra.mxu1 %v2734_v61  ;;  %v2792_v60 = vld [vmem:[#allocation4 + $0xb4] ss:$8 sps:$4 sm:$0xff]  }
  0x97   : > { %773 = vmatprep.subr.bf16.mxu0 %v2986_v0  ;;  %935 = vmatprep.subr.bf16.mxu1 %v2986_v0  ;;  %v2793_v61 = vld [vmem:[#allocation4 + $0x174] ss:$8 sps:$4 sm:$0xff]  }
  0x9a   : > { %774 = vmatpush2.bf16.msra.mxu0 %v2735_v63  ;;  %936 = vmatpush2.bf16.msra.mxu1 %v2736_v1  ;;  %v2795_v63 = vld [vmem:[#allocation4 + $0x164] ss:$8 sps:$4 sm:$0xff]   ;;  %v2796_v1 = vld [vmem:[#allocation4 + $0x94] ss:$8 sps:$4 sm:$0xff]  }
  0x9b   : > { %1061 = vmatprep.subr.bf16.mxu0 %v2986_v0  ;;  %1223 = vmatprep.subr.bf16.mxu1 %v2986_v0 }
  0x9d   : > { %776 = vmatmul.mubr.bf16.vlgmr.msra.gmra.mxu0 %v3185_v4  ;;  %938 = vmatmul.mubr.bf16.vlgmr.msra.gmra.mxu1 %v821_v6  ;;  %v1350_v6 = vrot.slane %v2801_v2, 2  ;;  %v2848_v2 = vld [vmem:[#allocation4 + $0x4d4] ss:$8 sps:$4 sm:$0xff]  }
  0x9e   : > { %1062 = vmatpush1.bf16.msra.mxu0 %v2742_v5  ;;  %1224 = vmatpush1.bf16.msra.mxu1 %v2743_v7  ;;  %v2798_v5 = vld [vmem:[#allocation4 + $0x84] ss:$8 sps:$4 sm:$0xff]  }
  0x9f   : > { %1063 = vmatprep.subr.bf16.mxu0 %v2986_v0  ;;  %1225 = vmatprep.subr.bf16.mxu1 %v2986_v0  ;;  %v2828_v7 = vld [vmem:[%s3115_s29 + $0xc] ss:$8 sps:$4 sm:$0x3c]  }
  0xa0   : > { %2486 = vmatprep.mubr.msk.bf16.mxu0 %vm457_vm0, %v3191_v8  ;;  %2502 = vmatprep.mubr.msk.bf16.mxu1 %vm457_vm0, %v1140_v9  ;;  %v2802_v9 = vld [vmem:[#allocation4 + $0x214] ss:$8 sps:$4 sm:$0xff]  }
  0xa2   : > { %1064 = vmatpush1.bf16.msra.mxu0 %v2744_v10  ;;  %1226 = vmatpush1.bf16.msra.mxu1 %v2745_v11  ;;  %v2803_v10 = vld [vmem:[#allocation4 + $0x2e4] ss:$8 sps:$4 sm:$0xff]   ;;  %v1793_v11 = vrot.slane %v2828_v7, 2 }
  0xa3   : > { %1065 = vmatprep.subr.bf16.mxu0 %v2986_v0  ;;  %1227 = vmatprep.subr.bf16.mxu1 %v2986_v0 }
  0xa6   : > { %1066 = vmatpush1.bf16.msra.mxu0 %v2746_v12  ;;  %1228 = vmatpush1.bf16.msra.mxu1 %v2747_v13  ;;  %v2804_v12 = vld [vmem:[#allocation4 + $0x204] ss:$8 sps:$4 sm:$0xff]   ;;  %v2805_v13 = vld [vmem:[#allocation4 + $0x2d4] ss:$8 sps:$4 sm:$0xff]  }
  0xa7   : > { %1067 = vmatprep.subr.bf16.mxu0 %v2986_v0  ;;  %1229 = vmatprep.subr.bf16.mxu1 %v2986_v0 }
  0xaa   : > { %1068 = vmatpush1.bf16.msra.mxu0 %v2748_v14  ;;  %1230 = vmatpush1.bf16.msra.mxu1 %v2749_v15  ;;  %v2806_v14 = vld [vmem:[#allocation4 + $0x1f4] ss:$8 sps:$4 sm:$0xff]   ;;  %v2807_v15 = vld [vmem:[#allocation4 + $0x2c4] ss:$8 sps:$4 sm:$0xff]  }
  0xab   : > { %1069 = vmatprep.subr.bf16.mxu0 %v2986_v0  ;;  %1231 = vmatprep.subr.bf16.mxu1 %v2986_v0 }
  0xae   : > { %1070 = vmatpush1.bf16.msra.mxu0 %v2750_v16  ;;  %1232 = vmatpush1.bf16.msra.mxu1 %v2751_v17  ;;  %v2809_v16 = vld [vmem:[#allocation4 + $0x2b4] ss:$8 sps:$4 sm:$0xff]   ;;  %v2811_v17 = vld [vmem:[#allocation4 + $0x2a4] ss:$8 sps:$4 sm:$0xff]  }
  0xaf   : > { %1071 = vmatprep.subr.bf16.mxu0 %v2986_v0  ;;  %1233 = vmatprep.subr.bf16.mxu1 %v2986_v0 }
  0xb2   : > { %1072 = vmatpush1.bf16.msra.mxu0 %v2752_v18  ;;  %1234 = vmatpush1.bf16.msra.mxu1 %v2753_v20  ;;  %v2812_v18 = vld [vmem:[#allocation4 + $0x1c4] ss:$8 sps:$4 sm:$0xff]   ;;  %v2813_v20 = vld [vmem:[#allocation4 + $0x294] ss:$8 sps:$4 sm:$0xff]  }
  0xb3   : > { %1073 = vmatprep.subr.bf16.mxu0 %v2986_v0  ;;  %1235 = vmatprep.subr.bf16.mxu1 %v2986_v0 }
  0xb6   : > { %1074 = vmatpush1.bf16.msra.mxu0 %v2754_v21  ;;  %1236 = vmatpush1.bf16.msra.mxu1 %v2755_v22  ;;  %v2814_v21 = vld [vmem:[#allocation4 + $0x1b4] ss:$8 sps:$4 sm:$0xff]   ;;  %v2815_v22 = vld [vmem:[#allocation4 + $0x284] ss:$8 sps:$4 sm:$0xff]  }
  0xb7   : > { %1075 = vmatprep.subr.bf16.mxu0 %v2986_v0  ;;  %1237 = vmatprep.subr.bf16.mxu1 %v2986_v0 }
  0xba   : > { %1076 = vmatpush1.bf16.msra.mxu0 %v2756_v23  ;;  %1238 = vmatpush1.bf16.msra.mxu1 %v2757_v24  ;;  %v2816_v23 = vld [vmem:[#allocation4 + $0x1a4] ss:$8 sps:$4 sm:$0xff]   ;;  %v2817_v24 = vld [vmem:[#allocation4 + $0x274] ss:$8 sps:$4 sm:$0xff]  }
  0xbb   : > { %1083 = vmatprep.subr.bf16.mxu0 %v2986_v0  ;;  %1245 = vmatprep.subr.bf16.mxu1 %v2986_v0 }
  0xbe   : > { %1084 = vmatpush2.bf16.msra.mxu0 %v2758_v25  ;;  %1246 = vmatpush2.bf16.msra.mxu1 %v2759_v26  ;;  %v2818_v25 = vld [vmem:[#allocation4 + $0x264] ss:$8 sps:$4 sm:$0xff]   ;;  %v2819_v26 = vld [vmem:[#allocation4 + $0x334] ss:$8 sps:$4 sm:$0xff]  }
  0xbf   : > { %1085 = vmatprep.subr.bf16.mxu0 %v2986_v0  ;;  %1247 = vmatprep.subr.bf16.mxu1 %v2986_v0 }
  0xc2   : > { %1086 = vmatpush2.bf16.msra.mxu0 %v2760_v27  ;;  %1248 = vmatpush2.bf16.msra.mxu1 %v2761_v28  ;;  %v2820_v27 = vld [vmem:[#allocation4 + $0x254] ss:$8 sps:$4 sm:$0xff]   ;;  %v2821_v28 = vld [vmem:[#allocation4 + $0x324] ss:$8 sps:$4 sm:$0xff]  }
  0xc3   : > { %1087 = vmatprep.subr.bf16.mxu0 %v2986_v0  ;;  %1249 = vmatprep.subr.bf16.mxu1 %v2986_v0 }
  0xc6   : > { %1088 = vmatpush2.bf16.msra.mxu0 %v2762_v29  ;;  %1250 = vmatpush2.bf16.msra.mxu1 %v2763_v30 }
  0xc7   : > { %1089 = vmatprep.subr.bf16.mxu0 %v2986_v0  ;;  %1251 = vmatprep.subr.bf16.mxu1 %v2986_v0 }
  0xca   : > { %1090 = vmatpush2.bf16.msra.mxu0 %v2764_v31  ;;  %1252 = vmatpush2.bf16.msra.mxu1 %v2765_v34  ;;  %v2822_v31 = vld [vmem:[#allocation4 + $0x244] ss:$8 sps:$4 sm:$0xff]  }
  0xcb   : > { %1091 = vmatprep.subr.bf16.mxu0 %v2986_v0  ;;  %1253 = vmatprep.subr.bf16.mxu1 %v2986_v0 }
  0xce   : > { %1092 = vmatpush2.bf16.msra.mxu0 %v2766_v35  ;;  %1254 = vmatpush2.bf16.msra.mxu1 %v2767_v37  ;;  %v2823_v35 = vld [vmem:[#allocation4 + $0x314] ss:$8 sps:$4 sm:$0xff]  }
  0xcf   : > { %1434 = vmatprep.subr.bf16.mxu0 %v2986_v0  ;;  %1561 = vmatprep.subr.bf16.mxu1 %v2986_v0 }
  0xd1   : > { %1094 = vmatmul.mubr.bf16.vlgmr.msra.gmra.mxu0 %v3225_v41  ;;  %1256 = vmatmul.mubr.bf16.vlgmr.msra.gmra.mxu1 %v1139_v38 }
  0xd2   : > { %1435 = vmatpush1.bf16.msra.mxu0 %v2773_v40  ;;  %1562 = vmatpush1.bf16.msra.mxu1 %v2774_v42  ;;  %v2824_v40 = vld [vmem:[#allocation4 + $0x234] ss:$8 sps:$4 sm:$0xff]  }
  0xd3   : > { %1436 = vmatprep.subr.bf16.mxu0 %v2986_v0  ;;  %1563 = vmatprep.subr.bf16.mxu1 %v2986_v0 }
  0xd4   : > { %2520 = vmatprep.mubr.msk.bf16.mxu0 %vm457_vm0, %v1351_v44  ;;  %2536 = vmatprep.mubr.msk.bf16.mxu1 %vm457_vm0, %v3121_v19  ;;  %v2782_v19 = vld [vmem:[#allocation4 + $0x34] ss:$8 sps:$4 sm:$0xff]  }
  0xd6   : > { %1437 = vmatpush1.bf16.msra.mxu0 %v2775_v43  ;;  %1564 = vmatpush1.bf16.msra.mxu1 %v2776_v45  ;;  %v2825_v43 = vld [vmem:[#allocation4 + $0x304] ss:$8 sps:$4 sm:$0xff]  }
  0xd7   : > { %1438 = vmatprep.subr.bf16.mxu0 %v2986_v0  ;;  %1565 = vmatprep.subr.bf16.mxu1 %v2986_v0  ;;  %v2826_v45 = vld [vmem:[#allocation4 + $0x224] ss:$8 sps:$4 sm:$0xff]  }
  0xda   : > { %1439 = vmatpush1.bf16.msra.mxu0 %v2777_v46  ;;  %1566 = vmatpush1.bf16.msra.mxu1 %v2778_v47  ;;  %v2830_v46 = vld [vmem:[%s3115_s29 + $0x8] ss:$8 sps:$4 sm:$0x3c]   ;;  %v2827_v47 = vld [vmem:[#allocation4 + $0x2f4] ss:$8 sps:$4 sm:$0xff]  }
  0xdb   : > { %1440 = vmatprep.subr.bf16.mxu0 %v2986_v0  ;;  %1567 = vmatprep.subr.bf16.mxu1 %v2986_v0 }
  0xde   : > { %1441 = vmatpush1.bf16.msra.mxu0 %v2779_v48  ;;  %1568 = vmatpush1.bf16.msra.mxu1 %v2780_v49  ;;  %v2857_v48 = vld [vmem:[%s3115_s29 + $0x14] ss:$8 sps:$4 sm:$0x3c]   ;;  %v1792_v49 = vrot.slane %v2830_v46, 2 }
  0xdf   : > { %1442 = vmatprep.subr.bf16.mxu0 %v2986_v0  ;;  %1569 = vmatprep.subr.bf16.mxu1 %v2986_v0 }
  0xe2   : > { %1443 = vmatpush1.bf16.msra.mxu0 %v2781_v50  ;;  %1570 = vmatpush1.bf16.msra.mxu1 %v2782_v19  ;;  %v2831_v50 = vld [vmem:[#allocation4 + $0x3b4] ss:$8 sps:$4 sm:$0xff]   ;;  %v2832_v19 = vld [vmem:[#allocation4 + $0x484] ss:$8 sps:$4 sm:$0xff]  }
  0xe3   : > { %1444 = vmatprep.subr.bf16.mxu0 %v2986_v0  ;;  %1571 = vmatprep.subr.bf16.mxu1 %v2986_v0 }
  0xe6   : > { %1445 = vmatpush1.bf16.msra.mxu0 %v2783_v51  ;;  %1572 = vmatpush1.bf16.msra.mxu1 %v2784_v52  ;;  %v2109_v51 = vrot.slane %v2857_v48, 2  ;;  %v2833_v52 = vld [vmem:[#allocation4 + $0x3a4] ss:$8 sps:$4 sm:$0xff]  }
  0xe7   : > { %1446 = vmatprep.subr.bf16.mxu0 %v2986_v0  ;;  %1573 = vmatprep.subr.bf16.mxu1 %v2986_v0 }
  0xea   : > { %1447 = vmatpush1.bf16.msra.mxu0 %v2785_v53  ;;  %1574 = vmatpush1.bf16.msra.mxu1 %v2786_v54  ;;  %v2834_v53 = vld [vmem:[#allocation4 + $0x474] ss:$8 sps:$4 sm:$0xff]  }
  0xeb   : > { %1448 = vmatprep.subr.bf16.mxu0 %v2986_v0  ;;  %1575 = vmatprep.subr.bf16.mxu1 %v2986_v0  ;;  %v2835_v54 = vld [vmem:[#allocation4 + $0x394] ss:$8 sps:$4 sm:$0xff]  }
  0xee   : > { %1449 = vmatpush1.bf16.msra.mxu0 %v2787_v55  ;;  %1576 = vmatpush1.bf16.msra.mxu1 %v2788_v56  ;;  %v2837_v55 = vld [vmem:[#allocation4 + $0x384] ss:$8 sps:$4 sm:$0xff]   ;;  %v2838_v56 = vld [vmem:[#allocation4 + $0x454] ss:$8 sps:$4 sm:$0xff]  }
  0xef   : > { %1456 = vmatprep.subr.bf16.mxu0 %v2986_v0  ;;  %1583 = vmatprep.subr.bf16.mxu1 %v2986_v0 }
  0xf2   : > { %1457 = vmatpush2.bf16.msra.mxu0 %v2789_v57  ;;  %1584 = vmatpush2.bf16.msra.mxu1 %v2790_v58  ;;  %v2840_v57 = vld [vmem:[#allocation4 + $0x444] ss:$8 sps:$4 sm:$0xff]  }
  0xf3   : > { %1458 = vmatprep.subr.bf16.mxu0 %v2986_v0  ;;  %1585 = vmatprep.subr.bf16.mxu1 %v2986_v0  ;;  %v2841_v58 = vld [vmem:[#allocation4 + $0x364] ss:$8 sps:$4 sm:$0xff]  }
  0xf6   : > { %1459 = vmatpush2.bf16.msra.mxu0 %v2791_v59  ;;  %1586 = vmatpush2.bf16.msra.mxu1 %v2792_v60  ;;  %v2842_v59 = vld [vmem:[#allocation4 + $0x434] ss:$8 sps:$4 sm:$0xff]  }
  0xf7   : > { %1460 = vmatprep.subr.bf16.mxu0 %v2986_v0  ;;  %1587 = vmatprep.subr.bf16.mxu1 %v2986_v0  ;;  %v2843_v60 = vld [vmem:[#allocation4 + $0x354] ss:$8 sps:$4 sm:$0xff]  }
  0xfa   : > { %1461 = vmatpush2.bf16.msra.mxu0 %v2793_v61  ;;  %1588 = vmatpush2.bf16.msra.mxu1 %v2794_v62  ;;  %v2844_v61 = vld [vmem:[#allocation4 + $0x424] ss:$8 sps:$4 sm:$0xff]  }
  0xfb   : > { %1462 = vmatprep.subr.bf16.mxu0 %v2986_v0  ;;  %1589 = vmatprep.subr.bf16.mxu1 %v2986_v0  ;;  %v2845_v62 = vld [vmem:[#allocation4 + $0x344] ss:$8 sps:$4 sm:$0xff]  }
  0xfe   : > { %1463 = vmatpush2.bf16.msra.mxu0 %v2795_v63  ;;  %1590 = vmatpush2.bf16.msra.mxu1 %v2796_v1  ;;  %v2846_v63 = vld [vmem:[#allocation4 + $0x414] ss:$8 sps:$4 sm:$0xff]   ;;  %v2847_v1 = vld [vmem:[#allocation4 + $0x404] ss:$8 sps:$4 sm:$0xff]  }
  0xff   : > { %1464 = vmatprep.subr.bf16.mxu0 %v2986_v0  ;;  %1591 = vmatprep.subr.bf16.mxu1 %v2986_v0 }
 0x102   : > { %1465 = vmatpush2.bf16.msra.mxu0 %v2797_v3  ;;  %1592 = vmatpush2.bf16.msra.mxu1 %v2798_v5  ;;  %v2849_v3 = vld [vmem:[#allocation4 + $0x3f4] ss:$8 sps:$4 sm:$0xff]   ;;  %v2850_v5 = vld [vmem:[#allocation4 + $0x4c4] ss:$8 sps:$4 sm:$0xff]  }
 0x103   : > { %1715 = vmatprep.subr.bf16.mxu0 %v2986_v0  ;;  %1876 = vmatprep.subr.bf16.mxu1 %v2986_v0 }
 0x105   : > { %1467 = vmatmul.mubr.bf16.vlgmr.msra.gmra.mxu0 %v1350_v6  ;;  %1594 = vmatmul.mubr.bf16.vlgmr.msra.gmra.mxu1 %v3138_v33  ;;  %v2808_v33 = vld [vmem:[#allocation4 + $0x1e4] ss:$8 sps:$4 sm:$0xff]  }
 0x106   : > { %1716 = vmatpush1.bf16.msra.mxu0 %v2802_v9  ;;  %1877 = vmatpush1.bf16.msra.mxu1 %v2803_v10  ;;  %v2851_v9 = vld [vmem:[#allocation4 + $0x3e4] ss:$8 sps:$4 sm:$0xff]  }
 0x107   : > { %1717 = vmatprep.subr.bf16.mxu0 %v2986_v0  ;;  %1878 = vmatprep.subr.bf16.mxu1 %v2986_v0 }
 0x108   : > { %2552 = vmatprep.mubr.msk.bf16.mxu0 %vm457_vm0, %v3149_v39  ;;  %2568 = vmatprep.mubr.msk.bf16.mxu1 %vm457_vm0, %v1793_v11  ;;  %v2810_v39 = vld [vmem:[#allocation4 + $0x1d4] ss:$8 sps:$4 sm:$0xff]  }
 0x109   : > { %v2852_v11 = vld [vmem:[#allocation4 + $0x4b4] ss:$8 sps:$4 sm:$0xff]  }
 0x10a   : > { %1718 = vmatpush1.bf16.msra.mxu0 %v2804_v12  ;;  %1879 = vmatpush1.bf16.msra.mxu1 %v2805_v13 }
 0x10b   : > { %1719 = vmatprep.subr.bf16.mxu0 %v2986_v0  ;;  %1880 = vmatprep.subr.bf16.mxu1 %v2986_v0 }
 0x10e   : > { %1720 = vmatpush1.bf16.msra.mxu0 %v2806_v14  ;;  %1881 = vmatpush1.bf16.msra.mxu1 %v2807_v15  ;;  %v2853_v15 = vld [vmem:[#allocation4 + $0x3d4] ss:$8 sps:$4 sm:$0xff]  }
 0x10f   : > { %1721 = vmatprep.subr.bf16.mxu0 %v2986_v0  ;;  %1882 = vmatprep.subr.bf16.mxu1 %v2986_v0 }
 0x112   : > { %1722 = vmatpush1.bf16.msra.mxu0 %v2808_v33  ;;  %1883 = vmatpush1.bf16.msra.mxu1 %v2809_v16  ;;  %v2854_v16 = vld [vmem:[#allocation4 + $0x4a4] ss:$8 sps:$4 sm:$0xff]  }
 0x113   : > { %1723 = vmatprep.subr.bf16.mxu0 %v2986_v0  ;;  %1884 = vmatprep.subr.bf16.mxu1 %v2986_v0 }
 0x116   : > { %1724 = vmatpush1.bf16.msra.mxu0 %v2810_v39  ;;  %1885 = vmatpush1.bf16.msra.mxu1 %v2811_v17  ;;  %v2855_v17 = vld [vmem:[#allocation4 + $0x3c4] ss:$8 sps:$4 sm:$0xff]  }
 0x117   : > { %1725 = vmatprep.subr.bf16.mxu0 %v2986_v0  ;;  %1886 = vmatprep.subr.bf16.mxu1 %v2986_v0 }
 0x11a   : > { %1726 = vmatpush1.bf16.msra.mxu0 %v2812_v18  ;;  %1887 = vmatpush1.bf16.msra.mxu1 %v2813_v20  ;;  %v2859_v18 = vld [vmem:[%s3115_s29 + $0x10] ss:$8 sps:$4 sm:$0x3c]   ;;  %v2856_v20 = vld [vmem:[#allocation4 + $0x494] ss:$8 sps:$4 sm:$0xff]  }
 0x11b   : > { %1727 = vmatprep.subr.bf16.mxu0 %v2986_v0  ;;  %1888 = vmatprep.subr.bf16.mxu1 %v2986_v0 }
 0x11e   : > { %1728 = vmatpush1.bf16.msra.mxu0 %v2814_v21  ;;  %1889 = vmatpush1.bf16.msra.mxu1 %v2815_v22  ;;  %v2108_v21 = vrot.slane %v2859_v18, 2 }
 0x11f   : > { %1729 = vmatprep.subr.bf16.mxu0 %v2986_v0  ;;  %1890 = vmatprep.subr.bf16.mxu1 %v2986_v0 }
 0x122   : > { %1730 = vmatpush1.bf16.msra.mxu0 %v2816_v23  ;;  %1891 = vmatpush1.bf16.msra.mxu1 %v2817_v24  ;;  %v306_v23 = vlaneseq }
 0x123   : > { %1737 = vmatprep.subr.bf16.mxu0 %v2986_v0  ;;  %1898 = vmatprep.subr.bf16.mxu1 %v2986_v0 }
 0x126   : > { %1738 = vmatpush2.bf16.msra.mxu0 %v2818_v25  ;;  %1899 = vmatpush2.bf16.msra.mxu1 %v2819_v26 }
 0x127   : > { %1739 = vmatprep.subr.bf16.mxu0 %v2986_v0  ;;  %1900 = vmatprep.subr.bf16.mxu1 %v2986_v0 }
 0x129   : > { %v495_v29 = vpop.f32.mrf.mxu0  ;;  %v622_v30 = vpop.f32.mrf.mxu1 }
 0x12a   : > { %1740 = vmatpush2.bf16.msra.mxu0 %v2820_v27  ;;  %v3283_v32 = vadd.f32 %v622_v30, %v495_v29  ;;  %1901 = vmatpush2.bf16.msra.mxu1 %v2821_v28  ;;  %v307_v28 = vshrl.u32 %v306_v23, 7  ;;  %v310_v30 = vstv %s304_s6  ;;  %s2271_s6 = scalar_lea.hbm %s3400_s5, %s2609_s21 }
 0x12b   : > { %v497_v34 = vpop.f32.mrf.mxu0  ;;  %1741 = vmatprep.subr.bf16.mxu0 %v2986_v0  ;;  %v624_v36 = vpop.f32.mrf.mxu1  ;;  %1902 = vmatprep.subr.bf16.mxu1 %v2986_v0 }
 0x12c   : > { %vm3333_vm1 = vcmp.lt.s32.totalorder %v307_v28, %v310_v30 }
 0x12d   : > { %v498_v37 = vpop.f32.mrf.mxu0  ;;  %v625_v38 = vpop.f32.mrf.mxu1 }
 0x12e   : > { %1742 = vmatpush2.bf16.msra.mxu0 %v2822_v31  ;;  %1903 = vmatpush2.bf16.msra.mxu1 %v2823_v35 }
 0x12f   : > { %v499_v42 = vpop.f32.mrf.mxu0  ;;  %1743 = vmatprep.subr.bf16.mxu0 %v2986_v0  ;;  %v626_v44 = vpop.f32.mrf.mxu1  ;;  %1904 = vmatprep.subr.bf16.mxu1 %v2986_v0 }
 0x132   : > { %1744 = vmatpush2.bf16.msra.mxu0 %v2824_v40  ;;  %1905 = vmatpush2.bf16.msra.mxu1 %v2825_v43 }
 0x133   : > { %1745 = vmatprep.subr.bf16.mxu0 %v2986_v0  ;;  %1906 = vmatprep.subr.bf16.mxu1 %v2986_v0 }
 0x136   : > { %1746 = vmatpush2.bf16.msra.mxu0 %v2826_v45  ;;  %1907 = vmatpush2.bf16.msra.mxu1 %v2827_v47 }
 0x137   : > { %2031 = vmatprep.subr.bf16.mxu0 %v2986_v0  ;;  %2192 = vmatprep.subr.bf16.mxu1 %v2986_v0 }
 0x139   : > { %1748 = vmatmul.mubr.bf16.vlgmr.msra.gmra.mxu0 %v3185_v4  ;;  %1909 = vmatmul.mubr.bf16.vlgmr.msra.gmra.mxu1 %v1792_v49  ;;  %v2836_v4 = vld [vmem:[#allocation4 + $0x464] ss:$8 sps:$4 sm:$0xff]  }
 0x13a   : > { %2032 = vmatpush1.bf16.msra.mxu0 %v2831_v50  ;;  %2193 = vmatpush1.bf16.msra.mxu1 %v2832_v19 }
 0x13b   : > { %2033 = vmatprep.subr.bf16.mxu0 %v2986_v0  ;;  %2194 = vmatprep.subr.bf16.mxu1 %v2986_v0 }
 0x13c   : > { %2584 = vmatprep.mubr.msk.bf16.mxu0 %vm457_vm0, %v3191_v8  ;;  %2600 = vmatprep.mubr.msk.bf16.mxu1 %vm457_vm0, %v2109_v51  ;;  %v2839_v8 = vld [vmem:[#allocation4 + $0x374] ss:$8 sps:$4 sm:$0xff]  }
 0x13e   : > { %2034 = vmatpush1.bf16.msra.mxu0 %v2833_v52  ;;  %2195 = vmatpush1.bf16.msra.mxu1 %v2834_v53 }
 0x13f   : > { %2035 = vmatprep.subr.bf16.mxu0 %v2986_v0  ;;  %2196 = vmatprep.subr.bf16.mxu1 %v2986_v0 }
 0x142   : > { %2036 = vmatpush1.bf16.msra.mxu0 %v2835_v54  ;;  %2197 = vmatpush1.bf16.msra.mxu1 %v2836_v4 }
 0x143   : > { %2037 = vmatprep.subr.bf16.mxu0 %v2986_v0  ;;  %2198 = vmatprep.subr.bf16.mxu1 %v2986_v0 }
 0x146   : > { %2038 = vmatpush1.bf16.msra.mxu0 %v2837_v55  ;;  %2199 = vmatpush1.bf16.msra.mxu1 %v2838_v56 }
 0x147   : > { %2039 = vmatprep.subr.bf16.mxu0 %v2986_v0  ;;  %2200 = vmatprep.subr.bf16.mxu1 %v2986_v0 }
 0x14a   : > { %2040 = vmatpush1.bf16.msra.mxu0 %v2839_v8  ;;  %2201 = vmatpush1.bf16.msra.mxu1 %v2840_v57 }
 0x14b   : > { %2041 = vmatprep.subr.bf16.mxu0 %v2986_v0  ;;  %2202 = vmatprep.subr.bf16.mxu1 %v2986_v0 }
 0x14e   : > { %2042 = vmatpush1.bf16.msra.mxu0 %v2841_v58  ;;  %2203 = vmatpush1.bf16.msra.mxu1 %v2842_v59 }
 0x14f   : > { %2043 = vmatprep.subr.bf16.mxu0 %v2986_v0  ;;  %2204 = vmatprep.subr.bf16.mxu1 %v2986_v0 }
 0x152   : > { %2044 = vmatpush1.bf16.msra.mxu0 %v2843_v60  ;;  %2205 = vmatpush1.bf16.msra.mxu1 %v2844_v61 }
 0x153   : > { %2045 = vmatprep.subr.bf16.mxu0 %v2986_v0  ;;  %2206 = vmatprep.subr.bf16.mxu1 %v2986_v0 }
 0x156   : > { %2046 = vmatpush1.bf16.msra.mxu0 %v2845_v62  ;;  %2207 = vmatpush1.bf16.msra.mxu1 %v2846_v63 }
 0x157   : > { %2053 = vmatprep.subr.bf16.mxu0 %v2986_v0  ;;  %2214 = vmatprep.subr.bf16.mxu1 %v2986_v0 }
 0x15a   : > { %2054 = vmatpush2.bf16.msra.mxu0 %v2847_v1  ;;  %2215 = vmatpush2.bf16.msra.mxu1 %v2848_v2 }
 0x15b   : > { %2055 = vmatprep.subr.bf16.mxu0 %v2986_v0  ;;  %2216 = vmatprep.subr.bf16.mxu1 %v2986_v0 }
 0x15d   : > { %v777_v6 = vpop.f32.mrf.mxu0  ;;  %v939_v7 = vpop.f32.mrf.mxu1 }
 0x15e   : > { %2056 = vmatpush2.bf16.msra.mxu0 %v2849_v3  ;;  %2217 = vmatpush2.bf16.msra.mxu1 %v2850_v5  ;;  %v783_v22 = vadd.f32 %v777_v6, %v3283_v32  ;;  %v2504_v32 = vld [vmem:[%s3399_s4] ss:$0 sm:$0xff]  ;;  %v2601_v3 = vld [vmem:[%s3398_s3 + $0x1] ss:$0 sm:$0xff] }
 0x15f   : > { %v779_v10 = vpop.f32.mrf.mxu0  ;;  %2057 = vmatprep.subr.bf16.mxu0 %v2986_v0  ;;  %v941_v12 = vpop.f32.mrf.mxu1  ;;  %2218 = vmatprep.subr.bf16.mxu1 %v2986_v0 }
 0x160   : > { %v945_v24 = vadd.f32 %v939_v7, %v783_v22 }
 0x161   : > { %v780_v13 = vpop.f32.mrf.mxu0  ;;  %v942_v14 = vpop.f32.mrf.mxu1 }
 0x162   : > { %2058 = vmatpush2.bf16.msra.mxu0 %v2851_v9  ;;  %2219 = vmatpush2.bf16.msra.mxu1 %v2852_v11  ;;  %v2602_v9 = vld [vmem:[%s3399_s4 + $0x1] ss:$0 sm:$0xff] }
 0x163   : > { %v781_v33 = vpop.f32.mrf.mxu0  ;;  %2059 = vmatprep.subr.bf16.mxu0 %v2986_v0  ;;  %v943_v39 = vpop.f32.mrf.mxu1  ;;  %2220 = vmatprep.subr.bf16.mxu1 %v2986_v0 }
 0x166   : > { %2060 = vmatpush2.bf16.msra.mxu0 %v2853_v15  ;;  %2221 = vmatpush2.bf16.msra.mxu1 %v2854_v16 }
 0x167   : > { %2061 = vmatprep.subr.bf16.mxu0 %v2986_v0  ;;  %2222 = vmatprep.subr.bf16.mxu1 %v2986_v0  ;;  %v2503_v0 = vld [vmem:[%s3398_s3] ss:$0 sm:$0xff] }
 0x16a   : > { %2062 = vmatpush2.bf16.msra.mxu0 %v2855_v17  ;;  %2223 = vmatpush2.bf16.msra.mxu1 %v2856_v20 }
 0x16d   : > { %2064 = vmatmul.mubr.bf16.vlgmr.msra.gmra.mxu0 %v3225_v41  ;;  %2225 = vmatmul.mubr.bf16.vlgmr.msra.gmra.mxu1 %v2108_v21 }
 0x191   : > { %v1095_v25 = vpop.f32.mrf.mxu0  ;;  %v1257_v27 = vpop.f32.mrf.mxu1 }
 0x192   : > { %v1101_v26 = vadd.f32 %v1095_v25, %v945_v24 }
 0x193   : > { %v1097_v29 = vpop.f32.mrf.mxu0  ;;  %v1259_v41 = vpop.f32.mrf.mxu1 }
 0x194   : > { %v1263_v31 = vadd.f32 %v1257_v27, %v1101_v26 }
 0x195   : > { %v1098_v34 = vpop.f32.mrf.mxu0  ;;  %v1260_v36 = vpop.f32.mrf.mxu1 }
 0x196   : > { %v1271_v35 = vmul.f32 %v2503_v0, %v1263_v31 }
 0x197   : > { %v1099_v38 = vpop.f32.mrf.mxu0  ;;  %v1261_v42 = vpop.f32.mrf.mxu1 }
 0x198   : > { %v1279_v40 = vadd.f32 %v2504_v32, %v1271_v35 }
 0x19a   : > { %v1282_v43 = vsel %vm3333_vm1, %v1279_v40, 0.0 }
 0x19b   : > { %v1283_v44 = vmax.f32 %v1282_v43, 0.0 }
 0x19d   : > { %v1284_v45 = vmin.f32 %v1283_v44, 20.0 }
 0x19f   : > { %v1285_v46 = vpack.c.bf16 %v1284_v45, %v1284_v45 }
 0x1a1   : > { %1286 = vst [vmem:[%s3342_s16] sm:$0xf] %v1285_v46 }
 0x1c5   : > { %v1468_v47 = vpop.f32.mrf.mxu0  ;;  %v1595_v48 = vpop.f32.mrf.mxu1 }
 0x1c6   : > { %v1596_v49 = vadd.f32 %v1595_v48, %v1468_v47 }
 0x1c7   : > { %v1470_v50 = vpop.f32.mrf.mxu0  ;;  %v1597_v19 = vpop.f32.mrf.mxu1 }
 0x1c9   : > { %v1471_v51 = vpop.f32.mrf.mxu0  ;;  %v1598_v52 = vpop.f32.mrf.mxu1 }
 0x1cb   : > { %v1472_v53 = vpop.f32.mrf.mxu0  ;;  %v1599_v54 = vpop.f32.mrf.mxu1 }
 0x1f9   : > { %v1749_v4 = vpop.f32.mrf.mxu0  ;;  %v1910_v55 = vpop.f32.mrf.mxu1 }
 0x1fa   : > { %v1755_v61 = vadd.f32 %v1749_v4, %v1596_v49 }
 0x1fb   : > { %v1751_v56 = vpop.f32.mrf.mxu0  ;;  %v1912_v8 = vpop.f32.mrf.mxu1 }
 0x1fc   : > { %v1916_v62 = vadd.f32 %v1910_v55, %v1755_v61 }
 0x1fd   : > { %v1752_v57 = vpop.f32.mrf.mxu0  ;;  %v1913_v58 = vpop.f32.mrf.mxu1 }
 0x1ff   : > { %v1753_v59 = vpop.f32.mrf.mxu0  ;;  %v1914_v60 = vpop.f32.mrf.mxu1 }
 0x22d   : > { %v2065_v63 = vpop.f32.mrf.mxu0  ;;  %v2226_v2 = vpop.f32.mrf.mxu1 }
 0x22e   : > { %v2071_v1 = vadd.f32 %v2065_v63, %v1916_v62 }
 0x22f   : > { %v2067_v5 = vpop.f32.mrf.mxu0  ;;  %v2228_v7 = vpop.f32.mrf.mxu1 }
 0x230   : > { %v2232_v6 = vadd.f32 %v2226_v2, %v2071_v1 }
 0x231   : > { %v2068_v10 = vpop.f32.mrf.mxu0  ;;  %v2229_v12 = vpop.f32.mrf.mxu1 }
 0x232   : > { %v2240_v11 = vmul.f32 %v2601_v3, %v2232_v6 }
 0x233   : > { %v2069_v13 = vpop.f32.mrf.mxu0  ;;  %v2230_v15 = vpop.f32.mrf.mxu1 }
 0x234   : > { %v2248_v14 = vadd.f32 %v2602_v9, %v2240_v11 }
 0x236   : > { %v2249_v33 = vsel %vm3333_vm1, %v2248_v14, 0.0 }
 0x237   : > { %v2250_v16 = vmax.f32 %v2249_v33, 0.0 }
 0x239   : > { %v2251_v39 = vmin.f32 %v2250_v16, 20.0 }
 0x23b   : > { %v2252_v17 = vpack.c.bf16 %v2251_v39, %v2251_v39 }
 0x23d   : > { %2253 = vst [vmem:[%s3342_s16 + $0x4] sm:$0xf] %v2252_v17 }
 0x23e   : > { %2911 = shalt.err (!%p2908_p8)
}
 0x23f   : > { %s2912_s15 = scalar_lea.hbm %s2271_s6, 128  ;;  %s2916_s17 = scalar_lea.hbm %s3400_s5, 256 }
 0x240   : > { %p2913_p10 = scmp.ne.s32.totalorder %s2271_s6, %s2912_s15  ;;  %p2917_p0 = scmp.lt.s32.totalorder %s2271_s6, %s3400_s5 }
 0x241   : > { %p2918_p1 = scmp.lt.s32.totalorder %s2916_s17, %s2912_s15 }
 0x242   : > { %p2914_p11 = pnand %p2913_p10, %p3061_p9 }
 0x243   : > { %p2919_p2 = por %p2918_p1, %p2917_p0 }
 0x244   : > { %p2915_p12 = pneg %p2914_p11 }
 0x246   : > { %p2920_p3 = pnand %p2919_p2, %p2915_p12 }
 0x248   : > { %2923 = shalt.err (!%p2920_p3)
}
 0x249   : > { %2614 = dma.vmem_to_hbm [thread:$0]  (%p3061_p9), %s2274_s22, 128, %s2271_s6, %s2255_s8  }
 0x24a PF: > { %p2626_p4 = scmp.ge.s32.totalorder %s2980_s27, 2  ;;  %s2285_s20 = sand.u32 1, %s2960_s23  }
 0x24b   : > { %s2286_s21 = scalar_lea.sflag [#allocation6], %s2285_s20 }
 0x24c   : > { %p2621_p5 = pnand %p2626_p4, %p3068_p13 }
 0x24e   : > { %p2622_p6 = pneg %p2621_p5 }
 0x250   : > { %2955 = dma.done.wait (%p2622_p6), %s2286_s21, 128  }
 0x251   : > { %2957 = vsyncadd (%p2622_p6), %s2286_s21, 4294967168  ;;  %s25_s27 = sadd.s32 1, %s2980_s27   ;;  %s3407_s23 = smov %s2964_s24 }
 0x252   : > { %p22_p7 = scmp.ge.s32.totalorder %s25_s27, 4   ;;  %s3408_s24 = smov %s2968_s0 }
 0x253   : > { %s3409_s0 = smov %s3074_s10  ;;  %s3410_s25 = smov %s2976_s26 }
 0x254   : > { %s3411_s26 = smov %s3413_s30  ;;  %24 = sbr.rel (!%p22_p7) target bundleno = 20 (0x14), region = 88 }
 0x259   :  { %2291 = vsyncpa [#allocation5], 1 }
 0x25a   :  { %2293 = vsyncpa [#allocation5 + $0x1], 1 }
 0x25b   :  { %2294 = vsyncpa [#allocation6], 1 }
 0x25c   :  { %2296 = vsyncpa [#allocation6 + $0x1], 1 }

</bundles_post_ra>
